<compile_context>
chip_gen: v5e
topology: v5e:2x2
jax: 0.10.0
libtpu: 0.0.40
codegen_flags: <defaults>
</compile_context>

<pallas_src>
import jax
import jax.numpy as jnp
from jax import lax
from jax.experimental import pallas as pl
from jax.experimental.pallas import tpu as pltpu

# ---- problem sizes (small, consistent with the module) ---------------------
T = 12            # total time steps
PREDICT_START = 8 # conditioning range = [0, 8), prediction range = [8, 12)
B = 8             # batch (series) size
F = 4             # features per step (feature 0 = target, rest = covariates)
H = 32            # LSTM hidden size
E = 8             # id-embedding size
NUM_CLASSES = 16  # embedding table rows
NUM_SAMPLES = 3   # Monte-Carlo samples


# ---------------------------------------------------------------------------
# Single-invocation kernel: applies the perturbation, runs the full LSTM
# recurrence with an unrolled in-kernel time loop, and emits perturbed data
# plus a merged (mu, sigma) slab for all timesteps.
# ---------------------------------------------------------------------------
def attack_lstm_kernel(data_ref, pert_ref, hc0_ref, wx_ref, wh_ref,
                       emb_gate_ref, head_w_ref, head_b_ref,
                       pdata_ref, musig_ref,
                       xgate_scr, h_all_scr):
    # ---- perturbation apply, all timesteps at once --------------------------
    data = data_ref[...]                                    # (T, B, F)
    pert = pert_ref[...]                                    # (T, B, 1)
    col = lax.broadcasted_iota(jnp.int32, data.shape, dimension=2)
    xp_all = jnp.where(col == 0, data * (1.0 + pert), data)
    pdata_ref[...] = xp_all

    # ---- h-independent gate contributions, hoisted out of the recurrence ----
    #   x_t @ W_x for all t (one MXU push total) + (emb @ W_e + b) from wrapper
    xg = jnp.dot(xp_all.reshape(T * B, F), wx_ref[...],
                 preferred_element_type=jnp.float32)        # (T*B, 4H)
    xgate_scr[...] = xg.reshape(T, B, 4 * H) + emb_gate_ref[...][None]

    wh = wh_ref[...]                                        # (H, 4H)

    # ---- LSTM recurrence: one MXU push per step, h/c carried in vregs -------
    def step(t, carry):
        h, c = carry
        gates = xgate_scr[t] + jnp.dot(h, wh,
                                       preferred_element_type=jnp.float32)
        sig = jax.nn.sigmoid(gates)                         # full-vreg EUP pass
        th = jnp.tanh(gates)                                # full-vreg EUP pass
        i_g = sig[:, 0 * H:1 * H]
        f_g = sig[:, 1 * H:2 * H]
        g_g = th[:, 2 * H:3 * H]
        o_g = sig[:, 3 * H:4 * H]
        c_new = f_g * c + i_g * g_g
        h_new = o_g * jnp.tanh(c_new)
        h_all_scr[t] = h_new
        return h_new, c_new

    lax.fori_loop(0, T, step, (hc0_ref[0], hc0_ref[1]), unroll=True)

    # ---- (mu, sigma) head over all timesteps in one matmul ------------------
    h_all = h_all_scr[...].reshape(T * B, H)
    out = jnp.dot(h_all, head_w_ref[...],
                  preferred_element_type=jnp.float32) + head_b_ref[...]  # (T*B, 2)
    ocol = lax.broadcasted_iota(jnp.int32, out.shape, dimension=1)
    # column 0 = mu (raw), column 1 = sigma = softplus(.) + eps
    musig = jnp.where(ocol == 0, out, jax.nn.softplus(out) + 1e-6)
    musig_ref[...] = musig.reshape(T, B, 2)


def run_attack_forward(data, perturbation, emb, h0, c0, params):
    """Single pallas_call over the full sequence.

    data:  [T, B, F] float32
    perturbation: [T, B] float32
    emb:   [B, E] float32 (id embedding, looked up in glue)
    h0,c0: [B, H] float32
    """
    wx, we, wh, b, wout, bout = params
    pert3 = perturbation[:, :, None]                 # [T, B, 1]
    emb_gate = jnp.dot(emb, we) + b                  # [B, 4H], time-invariant
    hc0 = jnp.stack([h0, c0], axis=0)                # [2, B, H]

    perturbed, musig = pl.pallas_call(
        attack_lstm_kernel,
        out_shape=(
            jax.ShapeDtypeStruct((T, B, F), jnp.float32),   # perturbed data
            jax.ShapeDtypeStruct((T, B, 2), jnp.float32),   # (mu, sigma) merged
        ),
        in_specs=[pl.BlockSpec(memory_space=pltpu.MemorySpace.VMEM)
                  for _ in range(8)],
        out_specs=(pl.BlockSpec(memory_space=pltpu.MemorySpace.VMEM),
                   pl.BlockSpec(memory_space=pltpu.MemorySpace.VMEM)),
        scratch_shapes=[
            pltpu.VMEM((T, B, 4 * H), jnp.float32),  # hoisted gate contributions
            pltpu.VMEM((T, B, H), jnp.float32),      # hidden states for the head
        ],
    )(data, pert3, hc0, wx, wh, emb_gate, wout, bout)

    return perturbed, musig[:, :, 0], musig[:, :, 1]


def attack_module_forward(data, perturbation, id_batch, v_batch,
                          hidden, cell, model_params, embed_table,
                          sample_key):
    """Mirror of AttackModule.forward(): returns (samples, sample_mu, sample_sigma)."""
    emb = jnp.take(embed_table, id_batch, axis=0)    # [B, E]

    _, mu, sigma = run_attack_forward(data, perturbation, emb,
                                      hidden, cell, model_params)

    # prediction range, de-normalized by v_batch (DeepAR-style scaling)
    pred_mu = mu[PREDICT_START:]        # [P, B]
    pred_sigma = sigma[PREDICT_START:]  # [P, B]
    scale = v_batch[:, 0][None, :]      # [1, B]
    shift = v_batch[:, 1][None, :]      # [1, B]
    sample_mu = (pred_mu * scale + shift).T        # [B, P]
    sample_sigma = (pred_sigma * scale).T          # [B, P]

    eps = jax.random.normal(sample_key,
                            (NUM_SAMPLES,) + sample_mu.shape,
                            dtype=jnp.float32)
    samples = sample_mu[None] + sample_sigma[None] * eps   # [S, B, P]
    return samples, sample_mu, sample_sigma


def init_params(key):
    # Note: if importing real DeepAR weights, PyTorch packs W_ih/W_hh as
    # (4H, in) with gate order (i, f, g, o); transpose / reorder accordingly.
    ks = jax.random.split(key, 8)
    s = 0.1
    wx = s * jax.random.normal(ks[0], (F, 4 * H), jnp.float32)
    we = s * jax.random.normal(ks[1], (E, 4 * H), jnp.float32)
    wh = s * jax.random.normal(ks[2], (H, 4 * H), jnp.float32)
    b = s * jax.random.normal(ks[3], (1, 4 * H), jnp.float32)
    wout = s * jax.random.normal(ks[4], (H, 2), jnp.float32)
    bout = s * jax.random.normal(ks[5], (1, 2), jnp.float32)
    embed = s * jax.random.normal(ks[6], (NUM_CLASSES, E), jnp.float32)
    return (wx, we, wh, b, wout, bout), embed


if __name__ == "__main__":
    root = jax.random.PRNGKey(0)
    (k_data, k_id, k_v1, k_v2, k_h, k_c,
     k_params, k_sample) = jax.random.split(root, 8)

    data = jax.random.normal(k_data, (T, B, F), jnp.float32)
    # AttackModule.__init__ : perturbation = zeros(data.shape[:2])
    perturbation = jnp.zeros((T, B), jnp.float32)
    id_batch = jax.random.randint(k_id, (B,), 0, NUM_CLASSES)
    v_batch = jnp.concatenate(
        [jnp.abs(jax.random.normal(k_v1, (B, 1))) + 0.5,
         0.1 * jax.random.normal(k_v2, (B, 1))], axis=1).astype(jnp.float32)
    hidden = 0.01 * jax.random.normal(k_h, (B, H), jnp.float32)
    cell = 0.01 * jax.random.normal(k_c, (B, H), jnp.float32)

    model_params, embed_table = init_params(k_params)

    samples, sample_mu, sample_sigma = attack_module_forward(
        data, perturbation, id_batch, v_batch, hidden, cell,
        model_params, embed_table, k_sample)

    jax.block_until_ready((samples, sample_mu, sample_sigma))
    assert samples.shape == (NUM_SAMPLES, B, T - PREDICT_START)
    assert sample_mu.shape == (B, T - PREDICT_START)
    assert sample_sigma.shape == (B, T - PREDICT_START)
    assert bool(jnp.all(jnp.isfinite(samples)))
    assert bool(jnp.all(sample_sigma > 0))
    print("KERNEL_OK")
</pallas_src>

<mosaic_0001>
module attributes {stable_mosaic.version = 11 : i64} {
  func.func @attack_lstm_kernel(%arg0: memref<12x8x4xf32, #tpu.memory_space<vmem>>, %arg1: memref<12x8x1xf32, #tpu.memory_space<vmem>>, %arg2: memref<2x8x32xf32, #tpu.memory_space<vmem>>, %arg3: memref<4x128xf32, #tpu.memory_space<vmem>>, %arg4: memref<32x128xf32, #tpu.memory_space<vmem>>, %arg5: memref<8x128xf32, #tpu.memory_space<vmem>>, %arg6: memref<32x2xf32, #tpu.memory_space<vmem>>, %arg7: memref<1x2xf32, #tpu.memory_space<vmem>>, %arg8: memref<12x8x4xf32, #tpu.memory_space<vmem>>, %arg9: memref<12x8x2xf32, #tpu.memory_space<vmem>>, %arg10: memref<12x8x128xf32, #tpu.memory_space<vmem>>, %arg11: memref<12x8x32xf32, #tpu.memory_space<vmem>>) attributes {dimension_semantics = [], scalar_prefetch = 0 : i64, scratch_operands = 2 : i64, tpu.core_type = #tpu.core_type<tc>} {
    %c0 = arith.constant 0 : index
    %c0_0 = arith.constant 0 : index
    %c0_1 = arith.constant 0 : index
    %0 = vector.load %arg0[%c0, %c0_0, %c0_1] : memref<12x8x4xf32, #tpu.memory_space<vmem>>, vector<12x8x4xf32>
    %c0_2 = arith.constant 0 : index
    %c0_3 = arith.constant 0 : index
    %c0_4 = arith.constant 0 : index
    %1 = vector.load %arg1[%c0_2, %c0_3, %c0_4] : memref<12x8x1xf32, #tpu.memory_space<vmem>>, vector<12x8x1xf32>
    %2 = tpu.iota {dimensions = array<i32: 2>} : vector<12x8x4xi32>
    %c0_i32 = arith.constant 0 : i32
    %3 = vector.broadcast %c0_i32 : i32 to vector<12x8x4xi32>
    %4 = arith.cmpi eq, %2, %3 : vector<12x8x4xi32>
    %cst = arith.constant 1.000000e+00 : f32
    %5 = vector.broadcast %cst : f32 to vector<12x8x1xf32>
    %6 = arith.addf %5, %1 : vector<12x8x1xf32>
    %7 = vector.broadcast %6 : vector<12x8x1xf32> to vector<12x8x4xf32>
    %8 = arith.mulf %0, %7 : vector<12x8x4xf32>
    %9 = arith.select %4, %8, %0 : vector<12x8x4xi1>, vector<12x8x4xf32>
    %c0_5 = arith.constant 0 : index
    %c0_6 = arith.constant 0 : index
    %c0_7 = arith.constant 0 : index
    %10 = vector.load %arg8[%c0_5, %c0_6, %c0_7] : memref<12x8x4xf32, #tpu.memory_space<vmem>>, vector<12x8x4xf32>
    tpu.vector_store %arg8[%c0_5, %c0_6, %c0_7], %9 {strides = array<i32>} : memref<12x8x4xf32, #tpu.memory_space<vmem>>, vector<12x8x4xf32>,
    %11 = vector.shape_cast %9 : vector<12x8x4xf32> to vector<96x4xf32>
    %c0_8 = arith.constant 0 : index
    %c0_9 = arith.constant 0 : index
    %12 = vector.load %arg3[%c0_8, %c0_9] : memref<4x128xf32, #tpu.memory_space<vmem>>, vector<4x128xf32>
    %cst_10 = arith.constant dense<0.000000e+00> : vector<96x128xf32>
    %13 = tpu.matmul %11, %12, %cst_10 {dimension_numbers = #tpu.dot_dimension_numbers<[1], [0], [0], [1], [0, 0, 1, 1], [], []>} : vector<96x4xf32>, vector<4x128xf32>, vector<96x128xf32> -> vector<96x128xf32>
    %14 = vector.shape_cast %13 : vector<96x128xf32> to vector<12x8x128xf32>
    %c0_11 = arith.constant 0 : index
    %c0_12 = arith.constant 0 : index
    %15 = vector.load %arg5[%c0_11, %c0_12] : memref<8x128xf32, #tpu.memory_space<vmem>>, vector<8x128xf32>
    %16 = vector.shape_cast %15 : vector<8x128xf32> to vector<1x8x128xf32>
    %17 = vector.broadcast %16 : vector<1x8x128xf32> to vector<12x8x128xf32>
    %18 = arith.addf %14, %17 : vector<12x8x128xf32>
    %c0_13 = arith.constant 0 : index
    %c0_14 = arith.constant 0 : index
    %c0_15 = arith.constant 0 : index
    %19 = vector.load %arg10[%c0_13, %c0_14, %c0_15] : memref<12x8x128xf32, #tpu.memory_space<vmem>>, vector<12x8x128xf32>
    tpu.vector_store %arg10[%c0_13, %c0_14, %c0_15], %18 {strides = array<i32>} : memref<12x8x128xf32, #tpu.memory_space<vmem>>, vector<12x8x128xf32>,
    %c0_16 = arith.constant 0 : index
    %c0_17 = arith.constant 0 : index
    %20 = vector.load %arg4[%c0_16, %c0_17] : memref<32x128xf32, #tpu.memory_space<vmem>>, vector<32x128xf32>
    %c0_18 = arith.constant 0 : index
    %c0_19 = arith.constant 0 : index
    %c0_20 = arith.constant 0 : index
    %21 = vector.load %arg2[%c0_18, %c0_19, %c0_20] : memref<2x8x32xf32, #tpu.memory_space<vmem>>, vector<1x8x32xf32>
    %22 = vector.shape_cast %21 : vector<1x8x32xf32> to vector<8x32xf32>
    %c1 = arith.constant 1 : index
    %c0_21 = arith.constant 0 : index
    %c0_22 = arith.constant 0 : index
    %23 = vector.load %arg2[%c1, %c0_21, %c0_22] : memref<2x8x32xf32, #tpu.memory_space<vmem>>, vector<1x8x32xf32>
    %24 = vector.shape_cast %23 : vector<1x8x32xf32> to vector<8x32xf32>
    %c0_i32_23 = arith.constant 0 : i32
    %25 = arith.index_cast %c0_i32_23 : i32 to index
    %c0_24 = arith.constant 0 : index
    %c0_25 = arith.constant 0 : index
    %26 = vector.load %arg10[%25, %c0_24, %c0_25] : memref<12x8x128xf32, #tpu.memory_space<vmem>>, vector<1x8x128xf32>
    %27 = vector.shape_cast %26 : vector<1x8x128xf32> to vector<8x128xf32>
    %cst_26 = arith.constant dense<0.000000e+00> : vector<8x128xf32>
    %28 = tpu.matmul %22, %20, %cst_26 {dimension_numbers = #tpu.dot_dimension_numbers<[1], [0], [0], [1], [0, 0, 1, 1], [], []>} : vector<8x32xf32>, vector<32x128xf32>, vector<8x128xf32> -> vector<8x128xf32>
    %29 = arith.addf %27, %28 : vector<8x128xf32>
    %30 = arith.negf %29 : vector<8x128xf32>
    %31 = math.exp %30 : vector<8x128xf32>
    %cst_27 = arith.constant 1.000000e+00 : f32
    %32 = vector.broadcast %cst_27 : f32 to vector<8x128xf32>
    %33 = arith.addf %32, %31 : vector<8x128xf32>
    %34 = arith.divf %32, %33 : vector<8x128xf32>
    %35 = math.tanh %29 : vector<8x128xf32>
    %36 = vector.extract_strided_slice %34 {offsets = [0, 0], sizes = [8, 32], strides = [1, 1]} : vector<8x128xf32> to vector<8x32xf32>
    %37 = vector.extract_strided_slice %34 {offsets = [0, 32], sizes = [8, 32], strides = [1, 1]} : vector<8x128xf32> to vector<8x32xf32>
    %38 = vector.extract_strided_slice %35 {offsets = [0, 64], sizes = [8, 32], strides = [1, 1]} : vector<8x128xf32> to vector<8x32xf32>
    %39 = vector.extract_strided_slice %34 {offsets = [0, 96], sizes = [8, 32], strides = [1, 1]} : vector<8x128xf32> to vector<8x32xf32>
    %40 = arith.mulf %37, %24 : vector<8x32xf32>
    %41 = arith.mulf %36, %38 : vector<8x32xf32>
    %42 = arith.addf %40, %41 : vector<8x32xf32>
    %43 = math.tanh %42 : vector<8x32xf32>
    %44 = arith.mulf %39, %43 : vector<8x32xf32>
    %45 = arith.index_cast %c0_i32_23 : i32 to index
    %c0_28 = arith.constant 0 : index
    %c0_29 = arith.constant 0 : index
    %46 = vector.load %arg11[%45, %c0_28, %c0_29] : memref<12x8x32xf32, #tpu.memory_space<vmem>>, vector<1x8x32xf32>
    %47 = vector.shape_cast %46 : vector<1x8x32xf32> to vector<8x32xf32>
    %48 = vector.shape_cast %44 : vector<8x32xf32> to vector<1x8x32xf32>
    tpu.vector_store %arg11[%45, %c0_28, %c0_29], %48 {strides = array<i32>} : memref<12x8x32xf32, #tpu.memory_space<vmem>>, vector<1x8x32xf32>,
    %c1_i32 = arith.constant 1 : i32
    %49 = arith.index_cast %c1_i32 : i32 to index
    %c0_30 = arith.constant 0 : index
    %c0_31 = arith.constant 0 : index
    %50 = vector.load %arg10[%49, %c0_30, %c0_31] : memref<12x8x128xf32, #tpu.memory_space<vmem>>, vector<1x8x128xf32>
    %51 = vector.shape_cast %50 : vector<1x8x128xf32> to vector<8x128xf32>
    %cst_32 = arith.constant dense<0.000000e+00> : vector<8x128xf32>
    %52 = tpu.matmul %44, %20, %cst_32 {dimension_numbers = #tpu.dot_dimension_numbers<[1], [0], [0], [1], [0, 0, 1, 1], [], []>} : vector<8x32xf32>, vector<32x128xf32>, vector<8x128xf32> -> vector<8x128xf32>
    %53 = arith.addf %51, %52 : vector<8x128xf32>
    %54 = arith.negf %53 : vector<8x128xf32>
    %55 = math.exp %54 : vector<8x128xf32>
    %cst_33 = arith.constant 1.000000e+00 : f32
    %56 = vector.broadcast %cst_33 : f32 to vector<8x128xf32>
    %57 = arith.addf %56, %55 : vector<8x128xf32>
    %58 = arith.divf %56, %57 : vector<8x128xf32>
    %59 = math.tanh %53 : vector<8x128xf32>
    %60 = vector.extract_strided_slice %58 {offsets = [0, 0], sizes = [8, 32], strides = [1, 1]} : vector<8x128xf32> to vector<8x32xf32>
    %61 = vector.extract_strided_slice %58 {offsets = [0, 32], sizes = [8, 32], strides = [1, 1]} : vector<8x128xf32> to vector<8x32xf32>
    %62 = vector.extract_strided_slice %59 {offsets = [0, 64], sizes = [8, 32], strides = [1, 1]} : vector<8x128xf32> to vector<8x32xf32>
    %63 = vector.extract_strided_slice %58 {offsets = [0, 96], sizes = [8, 32], strides = [1, 1]} : vector<8x128xf32> to vector<8x32xf32>
    %64 = arith.mulf %61, %42 : vector<8x32xf32>
    %65 = arith.mulf %60, %62 : vector<8x32xf32>
    %66 = arith.addf %64, %65 : vector<8x32xf32>
    %67 = math.tanh %66 : vector<8x32xf32>
    %68 = arith.mulf %63, %67 : vector<8x32xf32>
    %69 = arith.index_cast %c1_i32 : i32 to index
    %c0_34 = arith.constant 0 : index
    %c0_35 = arith.constant 0 : index
    %70 = vector.load %arg11[%69, %c0_34, %c0_35] : memref<12x8x32xf32, #tpu.memory_space<vmem>>, vector<1x8x32xf32>
    %71 = vector.shape_cast %70 : vector<1x8x32xf32> to vector<8x32xf32>
    %72 = vector.shape_cast %68 : vector<8x32xf32> to vector<1x8x32xf32>
    tpu.vector_store %arg11[%69, %c0_34, %c0_35], %72 {strides = array<i32>} : memref<12x8x32xf32, #tpu.memory_space<vmem>>, vector<1x8x32xf32>,
    %c2_i32 = arith.constant 2 : i32
    %73 = arith.index_cast %c2_i32 : i32 to index
    %c0_36 = arith.constant 0 : index
    %c0_37 = arith.constant 0 : index
    %74 = vector.load %arg10[%73, %c0_36, %c0_37] : memref<12x8x128xf32, #tpu.memory_space<vmem>>, vector<1x8x128xf32>
    %75 = vector.shape_cast %74 : vector<1x8x128xf32> to vector<8x128xf32>
    %cst_38 = arith.constant dense<0.000000e+00> : vector<8x128xf32>
    %76 = tpu.matmul %68, %20, %cst_38 {dimension_numbers = #tpu.dot_dimension_numbers<[1], [0], [0], [1], [0, 0, 1, 1], [], []>} : vector<8x32xf32>, vector<32x128xf32>, vector<8x128xf32> -> vector<8x128xf32>
    %77 = arith.addf %75, %76 : vector<8x128xf32>
    %78 = arith.negf %77 : vector<8x128xf32>
    %79 = math.exp %78 : vector<8x128xf32>
    %cst_39 = arith.constant 1.000000e+00 : f32
    %80 = vector.broadcast %cst_39 : f32 to vector<8x128xf32>
    %81 = arith.addf %80, %79 : vector<8x128xf32>
    %82 = arith.divf %80, %81 : vector<8x128xf32>
    %83 = math.tanh %77 : vector<8x128xf32>
    %84 = vector.extract_strided_slice %82 {offsets = [0, 0], sizes = [8, 32], strides = [1, 1]} : vector<8x128xf32> to vector<8x32xf32>
    %85 = vector.extract_strided_slice %82 {offsets = [0, 32], sizes = [8, 32], strides = [1, 1]} : vector<8x128xf32> to vector<8x32xf32>
    %86 = vector.extract_strided_slice %83 {offsets = [0, 64], sizes = [8, 32], strides = [1, 1]} : vector<8x128xf32> to vector<8x32xf32>
    %87 = vector.extract_strided_slice %82 {offsets = [0, 96], sizes = [8, 32], strides = [1, 1]} : vector<8x128xf32> to vector<8x32xf32>
    %88 = arith.mulf %85, %66 : vector<8x32xf32>
    %89 = arith.mulf %84, %86 : vector<8x32xf32>
    %90 = arith.addf %88, %89 : vector<8x32xf32>
    %91 = math.tanh %90 : vector<8x32xf32>
    %92 = arith.mulf %87, %91 : vector<8x32xf32>
    %93 = arith.index_cast %c2_i32 : i32 to index
    %c0_40 = arith.constant 0 : index
    %c0_41 = arith.constant 0 : index
    %94 = vector.load %arg11[%93, %c0_40, %c0_41] : memref<12x8x32xf32, #tpu.memory_space<vmem>>, vector<1x8x32xf32>
    %95 = vector.shape_cast %94 : vector<1x8x32xf32> to vector<8x32xf32>
    %96 = vector.shape_cast %92 : vector<8x32xf32> to vector<1x8x32xf32>
    tpu.vector_store %arg11[%93, %c0_40, %c0_41], %96 {strides = array<i32>} : memref<12x8x32xf32, #tpu.memory_space<vmem>>, vector<1x8x32xf32>,
    %c3_i32 = arith.constant 3 : i32
    %97 = arith.index_cast %c3_i32 : i32 to index
    %c0_42 = arith.constant 0 : index
    %c0_43 = arith.constant 0 : index
    %98 = vector.load %arg10[%97, %c0_42, %c0_43] : memref<12x8x128xf32, #tpu.memory_space<vmem>>, vector<1x8x128xf32>
    %99 = vector.shape_cast %98 : vector<1x8x128xf32> to vector<8x128xf32>
    %cst_44 = arith.constant dense<0.000000e+00> : vector<8x128xf32>
    %100 = tpu.matmul %92, %20, %cst_44 {dimension_numbers = #tpu.dot_dimension_numbers<[1], [0], [0], [1], [0, 0, 1, 1], [], []>} : vector<8x32xf32>, vector<32x128xf32>, vector<8x128xf32> -> vector<8x128xf32>
    %101 = arith.addf %99, %100 : vector<8x128xf32>
    %102 = arith.negf %101 : vector<8x128xf32>
    %103 = math.exp %102 : vector<8x128xf32>
    %cst_45 = arith.constant 1.000000e+00 : f32
    %104 = vector.broadcast %cst_45 : f32 to vector<8x128xf32>
    %105 = arith.addf %104, %103 : vector<8x128xf32>
    %106 = arith.divf %104, %105 : vector<8x128xf32>
    %107 = math.tanh %101 : vector<8x128xf32>
    %108 = vector.extract_strided_slice %106 {offsets = [0, 0], sizes = [8, 32], strides = [1, 1]} : vector<8x128xf32> to vector<8x32xf32>
    %109 = vector.extract_strided_slice %106 {offsets = [0, 32], sizes = [8, 32], strides = [1, 1]} : vector<8x128xf32> to vector<8x32xf32>
    %110 = vector.extract_strided_slice %107 {offsets = [0, 64], sizes = [8, 32], strides = [1, 1]} : vector<8x128xf32> to vector<8x32xf32>
    %111 = vector.extract_strided_slice %106 {offsets = [0, 96], sizes = [8, 32], strides = [1, 1]} : vector<8x128xf32> to vector<8x32xf32>
    %112 = arith.mulf %109, %90 : vector<8x32xf32>
    %113 = arith.mulf %108, %110 : vector<8x32xf32>
    %114 = arith.addf %112, %113 : vector<8x32xf32>
    %115 = math.tanh %114 : vector<8x32xf32>
    %116 = arith.mulf %111, %115 : vector<8x32xf32>
    %117 = arith.index_cast %c3_i32 : i32 to index
    %c0_46 = arith.constant 0 : index
    %c0_47 = arith.constant 0 : index
    %118 = vector.load %arg11[%117, %c0_46, %c0_47] : memref<12x8x32xf32, #tpu.memory_space<vmem>>, vector<1x8x32xf32>
    %119 = vector.shape_cast %118 : vector<1x8x32xf32> to vector<8x32xf32>
    %120 = vector.shape_cast %116 : vector<8x32xf32> to vector<1x8x32xf32>
    tpu.vector_store %arg11[%117, %c0_46, %c0_47], %120 {strides = array<i32>} : memref<12x8x32xf32, #tpu.memory_space<vmem>>, vector<1x8x32xf32>,
    %c4_i32 = arith.constant 4 : i32
    %121 = arith.index_cast %c4_i32 : i32 to index
    %c0_48 = arith.constant 0 : index
    %c0_49 = arith.constant 0 : index
    %122 = vector.load %arg10[%121, %c0_48, %c0_49] : memref<12x8x128xf32, #tpu.memory_space<vmem>>, vector<1x8x128xf32>
    %123 = vector.shape_cast %122 : vector<1x8x128xf32> to vector<8x128xf32>
    %cst_50 = arith.constant dense<0.000000e+00> : vector<8x128xf32>
    %124 = tpu.matmul %116, %20, %cst_50 {dimension_numbers = #tpu.dot_dimension_numbers<[1], [0], [0], [1], [0, 0, 1, 1], [], []>} : vector<8x32xf32>, vector<32x128xf32>, vector<8x128xf32> -> vector<8x128xf32>
    %125 = arith.addf %123, %124 : vector<8x128xf32>
    %126 = arith.negf %125 : vector<8x128xf32>
    %127 = math.exp %126 : vector<8x128xf32>
    %cst_51 = arith.constant 1.000000e+00 : f32
    %128 = vector.broadcast %cst_51 : f32 to vector<8x128xf32>
    %129 = arith.addf %128, %127 : vector<8x128xf32>
    %130 = arith.divf %128, %129 : vector<8x128xf32>
    %131 = math.tanh %125 : vector<8x128xf32>
    %132 = vector.extract_strided_slice %130 {offsets = [0, 0], sizes = [8, 32], strides = [1, 1]} : vector<8x128xf32> to vector<8x32xf32>
    %133 = vector.extract_strided_slice %130 {offsets = [0, 32], sizes = [8, 32], strides = [1, 1]} : vector<8x128xf32> to vector<8x32xf32>
    %134 = vector.extract_strided_slice %131 {offsets = [0, 64], sizes = [8, 32], strides = [1, 1]} : vector<8x128xf32> to vector<8x32xf32>
    %135 = vector.extract_strided_slice %130 {offsets = [0, 96], sizes = [8, 32], strides = [1, 1]} : vector<8x128xf32> to vector<8x32xf32>
    %136 = arith.mulf %133, %114 : vector<8x32xf32>
    %137 = arith.mulf %132, %134 : vector<8x32xf32>
    %138 = arith.addf %136, %137 : vector<8x32xf32>
    %139 = math.tanh %138 : vector<8x32xf32>
    %140 = arith.mulf %135, %139 : vector<8x32xf32>
    %141 = arith.index_cast %c4_i32 : i32 to index
    %c0_52 = arith.constant 0 : index
    %c0_53 = arith.constant 0 : index
    %142 = vector.load %arg11[%141, %c0_52, %c0_53] : memref<12x8x32xf32, #tpu.memory_space<vmem>>, vector<1x8x32xf32>
    %143 = vector.shape_cast %142 : vector<1x8x32xf32> to vector<8x32xf32>
    %144 = vector.shape_cast %140 : vector<8x32xf32> to vector<1x8x32xf32>
    tpu.vector_store %arg11[%141, %c0_52, %c0_53], %144 {strides = array<i32>} : memref<12x8x32xf32, #tpu.memory_space<vmem>>, vector<1x8x32xf32>,
    %c5_i32 = arith.constant 5 : i32
    %145 = arith.index_cast %c5_i32 : i32 to index
    %c0_54 = arith.constant 0 : index
    %c0_55 = arith.constant 0 : index
    %146 = vector.load %arg10[%145, %c0_54, %c0_55] : memref<12x8x128xf32, #tpu.memory_space<vmem>>, vector<1x8x128xf32>
    %147 = vector.shape_cast %146 : vector<1x8x128xf32> to vector<8x128xf32>
    %cst_56 = arith.constant dense<0.000000e+00> : vector<8x128xf32>
    %148 = tpu.matmul %140, %20, %cst_56 {dimension_numbers = #tpu.dot_dimension_numbers<[1], [0], [0], [1], [0, 0, 1, 1], [], []>} : vector<8x32xf32>, vector<32x128xf32>, vector<8x128xf32> -> vector<8x128xf32>
    %149 = arith.addf %147, %148 : vector<8x128xf32>
    %150 = arith.negf %149 : vector<8x128xf32>
    %151 = math.exp %150 : vector<8x128xf32>
    %cst_57 = arith.constant 1.000000e+00 : f32
    %152 = vector.broadcast %cst_57 : f32 to vector<8x128xf32>
    %153 = arith.addf %152, %151 : vector<8x128xf32>
    %154 = arith.divf %152, %153 : vector<8x128xf32>
    %155 = math.tanh %149 : vector<8x128xf32>
    %156 = vector.extract_strided_slice %154 {offsets = [0, 0], sizes = [8, 32], strides = [1, 1]} : vector<8x128xf32> to vector<8x32xf32>
    %157 = vector.extract_strided_slice %154 {offsets = [0, 32], sizes = [8, 32], strides = [1, 1]} : vector<8x128xf32> to vector<8x32xf32>
    %158 = vector.extract_strided_slice %155 {offsets = [0, 64], sizes = [8, 32], strides = [1, 1]} : vector<8x128xf32> to vector<8x32xf32>
    %159 = vector.extract_strided_slice %154 {offsets = [0, 96], sizes = [8, 32], strides = [1, 1]} : vector<8x128xf32> to vector<8x32xf32>
    %160 = arith.mulf %157, %138 : vector<8x32xf32>
    %161 = arith.mulf %156, %158 : vector<8x32xf32>
    %162 = arith.addf %160, %161 : vector<8x32xf32>
    %163 = math.tanh %162 : vector<8x32xf32>
    %164 = arith.mulf %159, %163 : vector<8x32xf32>
    %165 = arith.index_cast %c5_i32 : i32 to index
    %c0_58 = arith.constant 0 : index
    %c0_59 = arith.constant 0 : index
    %166 = vector.load %arg11[%165, %c0_58, %c0_59] : memref<12x8x32xf32, #tpu.memory_space<vmem>>, vector<1x8x32xf32>
    %167 = vector.shape_cast %166 : vector<1x8x32xf32> to vector<8x32xf32>
    %168 = vector.shape_cast %164 : vector<8x32xf32> to vector<1x8x32xf32>
    tpu.vector_store %arg11[%165, %c0_58, %c0_59], %168 {strides = array<i32>} : memref<12x8x32xf32, #tpu.memory_space<vmem>>, vector<1x8x32xf32>,
    %c6_i32 = arith.constant 6 : i32
    %169 = arith.index_cast %c6_i32 : i32 to index
    %c0_60 = arith.constant 0 : index
    %c0_61 = arith.constant 0 : index
    %170 = vector.load %arg10[%169, %c0_60, %c0_61] : memref<12x8x128xf32, #tpu.memory_space<vmem>>, vector<1x8x128xf32>
    %171 = vector.shape_cast %170 : vector<1x8x128xf32> to vector<8x128xf32>
    %cst_62 = arith.constant dense<0.000000e+00> : vector<8x128xf32>
    %172 = tpu.matmul %164, %20, %cst_62 {dimension_numbers = #tpu.dot_dimension_numbers<[1], [0], [0], [1], [0, 0, 1, 1], [], []>} : vector<8x32xf32>, vector<32x128xf32>, vector<8x128xf32> -> vector<8x128xf32>
    %173 = arith.addf %171, %172 : vector<8x128xf32>
    %174 = arith.negf %173 : vector<8x128xf32>
    %175 = math.exp %174 : vector<8x128xf32>
    %cst_63 = arith.constant 1.000000e+00 : f32
    %176 = vector.broadcast %cst_63 : f32 to vector<8x128xf32>
    %177 = arith.addf %176, %175 : vector<8x128xf32>
    %178 = arith.divf %176, %177 : vector<8x128xf32>
    %179 = math.tanh %173 : vector<8x128xf32>
    %180 = vector.extract_strided_slice %178 {offsets = [0, 0], sizes = [8, 32], strides = [1, 1]} : vector<8x128xf32> to vector<8x32xf32>
    %181 = vector.extract_strided_slice %178 {offsets = [0, 32], sizes = [8, 32], strides = [1, 1]} : vector<8x128xf32> to vector<8x32xf32>
    %182 = vector.extract_strided_slice %179 {offsets = [0, 64], sizes = [8, 32], strides = [1, 1]} : vector<8x128xf32> to vector<8x32xf32>
    %183 = vector.extract_strided_slice %178 {offsets = [0, 96], sizes = [8, 32], strides = [1, 1]} : vector<8x128xf32> to vector<8x32xf32>
    %184 = arith.mulf %181, %162 : vector<8x32xf32>
    %185 = arith.mulf %180, %182 : vector<8x32xf32>
    %186 = arith.addf %184, %185 : vector<8x32xf32>
    %187 = math.tanh %186 : vector<8x32xf32>
    %188 = arith.mulf %183, %187 : vector<8x32xf32>
    %189 = arith.index_cast %c6_i32 : i32 to index
    %c0_64 = arith.constant 0 : index
    %c0_65 = arith.constant 0 : index
    %190 = vector.load %arg11[%189, %c0_64, %c0_65] : memref<12x8x32xf32, #tpu.memory_space<vmem>>, vector<1x8x32xf32>
    %191 = vector.shape_cast %190 : vector<1x8x32xf32> to vector<8x32xf32>
    %192 = vector.shape_cast %188 : vector<8x32xf32> to vector<1x8x32xf32>
    tpu.vector_store %arg11[%189, %c0_64, %c0_65], %192 {strides = array<i32>} : memref<12x8x32xf32, #tpu.memory_space<vmem>>, vector<1x8x32xf32>,
    %c7_i32 = arith.constant 7 : i32
    %193 = arith.index_cast %c7_i32 : i32 to index
    %c0_66 = arith.constant 0 : index
    %c0_67 = arith.constant 0 : index
    %194 = vector.load %arg10[%193, %c0_66, %c0_67] : memref<12x8x128xf32, #tpu.memory_space<vmem>>, vector<1x8x128xf32>
    %195 = vector.shape_cast %194 : vector<1x8x128xf32> to vector<8x128xf32>
    %cst_68 = arith.constant dense<0.000000e+00> : vector<8x128xf32>
    %196 = tpu.matmul %188, %20, %cst_68 {dimension_numbers = #tpu.dot_dimension_numbers<[1], [0], [0], [1], [0, 0, 1, 1], [], []>} : vector<8x32xf32>, vector<32x128xf32>, vector<8x128xf32> -> vector<8x128xf32>
    %197 = arith.addf %195, %196 : vector<8x128xf32>
    %198 = arith.negf %197 : vector<8x128xf32>
    %199 = math.exp %198 : vector<8x128xf32>
    %cst_69 = arith.constant 1.000000e+00 : f32
    %200 = vector.broadcast %cst_69 : f32 to vector<8x128xf32>
    %201 = arith.addf %200, %199 : vector<8x128xf32>
    %202 = arith.divf %200, %201 : vector<8x128xf32>
    %203 = math.tanh %197 : vector<8x128xf32>
    %204 = vector.extract_strided_slice %202 {offsets = [0, 0], sizes = [8, 32], strides = [1, 1]} : vector<8x128xf32> to vector<8x32xf32>
    %205 = vector.extract_strided_slice %202 {offsets = [0, 32], sizes = [8, 32], strides = [1, 1]} : vector<8x128xf32> to vector<8x32xf32>
    %206 = vector.extract_strided_slice %203 {offsets = [0, 64], sizes = [8, 32], strides = [1, 1]} : vector<8x128xf32> to vector<8x32xf32>
    %207 = vector.extract_strided_slice %202 {offsets = [0, 96], sizes = [8, 32], strides = [1, 1]} : vector<8x128xf32> to vector<8x32xf32>
    %208 = arith.mulf %205, %186 : vector<8x32xf32>
    %209 = arith.mulf %204, %206 : vector<8x32xf32>
    %210 = arith.addf %208, %209 : vector<8x32xf32>
    %211 = math.tanh %210 : vector<8x32xf32>
    %212 = arith.mulf %207, %211 : vector<8x32xf32>
    %213 = arith.index_cast %c7_i32 : i32 to index
    %c0_70 = arith.constant 0 : index
    %c0_71 = arith.constant 0 : index
    %214 = vector.load %arg11[%213, %c0_70, %c0_71] : memref<12x8x32xf32, #tpu.memory_space<vmem>>, vector<1x8x32xf32>
    %215 = vector.shape_cast %214 : vector<1x8x32xf32> to vector<8x32xf32>
    %216 = vector.shape_cast %212 : vector<8x32xf32> to vector<1x8x32xf32>
    tpu.vector_store %arg11[%213, %c0_70, %c0_71], %216 {strides = array<i32>} : memref<12x8x32xf32, #tpu.memory_space<vmem>>, vector<1x8x32xf32>,
    %c8_i32 = arith.constant 8 : i32
    %217 = arith.index_cast %c8_i32 : i32 to index
    %c0_72 = arith.constant 0 : index
    %c0_73 = arith.constant 0 : index
    %218 = vector.load %arg10[%217, %c0_72, %c0_73] : memref<12x8x128xf32, #tpu.memory_space<vmem>>, vector<1x8x128xf32>
    %219 = vector.shape_cast %218 : vector<1x8x128xf32> to vector<8x128xf32>
    %cst_74 = arith.constant dense<0.000000e+00> : vector<8x128xf32>
    %220 = tpu.matmul %212, %20, %cst_74 {dimension_numbers = #tpu.dot_dimension_numbers<[1], [0], [0], [1], [0, 0, 1, 1], [], []>} : vector<8x32xf32>, vector<32x128xf32>, vector<8x128xf32> -> vector<8x128xf32>
    %221 = arith.addf %219, %220 : vector<8x128xf32>
    %222 = arith.negf %221 : vector<8x128xf32>
    %223 = math.exp %222 : vector<8x128xf32>
    %cst_75 = arith.constant 1.000000e+00 : f32
    %224 = vector.broadcast %cst_75 : f32 to vector<8x128xf32>
    %225 = arith.addf %224, %223 : vector<8x128xf32>
    %226 = arith.divf %224, %225 : vector<8x128xf32>
    %227 = math.tanh %221 : vector<8x128xf32>
    %228 = vector.extract_strided_slice %226 {offsets = [0, 0], sizes = [8, 32], strides = [1, 1]} : vector<8x128xf32> to vector<8x32xf32>
    %229 = vector.extract_strided_slice %226 {offsets = [0, 32], sizes = [8, 32], strides = [1, 1]} : vector<8x128xf32> to vector<8x32xf32>
    %230 = vector.extract_strided_slice %227 {offsets = [0, 64], sizes = [8, 32], strides = [1, 1]} : vector<8x128xf32> to vector<8x32xf32>
    %231 = vector.extract_strided_slice %226 {offsets = [0, 96], sizes = [8, 32], strides = [1, 1]} : vector<8x128xf32> to vector<8x32xf32>
    %232 = arith.mulf %229, %210 : vector<8x32xf32>
    %233 = arith.mulf %228, %230 : vector<8x32xf32>
    %234 = arith.addf %232, %233 : vector<8x32xf32>
    %235 = math.tanh %234 : vector<8x32xf32>
    %236 = arith.mulf %231, %235 : vector<8x32xf32>
    %237 = arith.index_cast %c8_i32 : i32 to index
    %c0_76 = arith.constant 0 : index
    %c0_77 = arith.constant 0 : index
    %238 = vector.load %arg11[%237, %c0_76, %c0_77] : memref<12x8x32xf32, #tpu.memory_space<vmem>>, vector<1x8x32xf32>
    %239 = vector.shape_cast %238 : vector<1x8x32xf32> to vector<8x32xf32>
    %240 = vector.shape_cast %236 : vector<8x32xf32> to vector<1x8x32xf32>
    tpu.vector_store %arg11[%237, %c0_76, %c0_77], %240 {strides = array<i32>} : memref<12x8x32xf32, #tpu.memory_space<vmem>>, vector<1x8x32xf32>,
    %c9_i32 = arith.constant 9 : i32
    %241 = arith.index_cast %c9_i32 : i32 to index
    %c0_78 = arith.constant 0 : index
    %c0_79 = arith.constant 0 : index
    %242 = vector.load %arg10[%241, %c0_78, %c0_79] : memref<12x8x128xf32, #tpu.memory_space<vmem>>, vector<1x8x128xf32>
    %243 = vector.shape_cast %242 : vector<1x8x128xf32> to vector<8x128xf32>
    %cst_80 = arith.constant dense<0.000000e+00> : vector<8x128xf32>
    %244 = tpu.matmul %236, %20, %cst_80 {dimension_numbers = #tpu.dot_dimension_numbers<[1], [0], [0], [1], [0, 0, 1, 1], [], []>} : vector<8x32xf32>, vector<32x128xf32>, vector<8x128xf32> -> vector<8x128xf32>
    %245 = arith.addf %243, %244 : vector<8x128xf32>
    %246 = arith.negf %245 : vector<8x128xf32>
    %247 = math.exp %246 : vector<8x128xf32>
    %cst_81 = arith.constant 1.000000e+00 : f32
    %248 = vector.broadcast %cst_81 : f32 to vector<8x128xf32>
    %249 = arith.addf %248, %247 : vector<8x128xf32>
    %250 = arith.divf %248, %249 : vector<8x128xf32>
    %251 = math.tanh %245 : vector<8x128xf32>
    %252 = vector.extract_strided_slice %250 {offsets = [0, 0], sizes = [8, 32], strides = [1, 1]} : vector<8x128xf32> to vector<8x32xf32>
    %253 = vector.extract_strided_slice %250 {offsets = [0, 32], sizes = [8, 32], strides = [1, 1]} : vector<8x128xf32> to vector<8x32xf32>
    %254 = vector.extract_strided_slice %251 {offsets = [0, 64], sizes = [8, 32], strides = [1, 1]} : vector<8x128xf32> to vector<8x32xf32>
    %255 = vector.extract_strided_slice %250 {offsets = [0, 96], sizes = [8, 32], strides = [1, 1]} : vector<8x128xf32> to vector<8x32xf32>
    %256 = arith.mulf %253, %234 : vector<8x32xf32>
    %257 = arith.mulf %252, %254 : vector<8x32xf32>
    %258 = arith.addf %256, %257 : vector<8x32xf32>
    %259 = math.tanh %258 : vector<8x32xf32>
    %260 = arith.mulf %255, %259 : vector<8x32xf32>
    %261 = arith.index_cast %c9_i32 : i32 to index
    %c0_82 = arith.constant 0 : index
    %c0_83 = arith.constant 0 : index
    %262 = vector.load %arg11[%261, %c0_82, %c0_83] : memref<12x8x32xf32, #tpu.memory_space<vmem>>, vector<1x8x32xf32>
    %263 = vector.shape_cast %262 : vector<1x8x32xf32> to vector<8x32xf32>
    %264 = vector.shape_cast %260 : vector<8x32xf32> to vector<1x8x32xf32>
    tpu.vector_store %arg11[%261, %c0_82, %c0_83], %264 {strides = array<i32>} : memref<12x8x32xf32, #tpu.memory_space<vmem>>, vector<1x8x32xf32>,
    %c10_i32 = arith.constant 10 : i32
    %265 = arith.index_cast %c10_i32 : i32 to index
    %c0_84 = arith.constant 0 : index
    %c0_85 = arith.constant 0 : index
    %266 = vector.load %arg10[%265, %c0_84, %c0_85] : memref<12x8x128xf32, #tpu.memory_space<vmem>>, vector<1x8x128xf32>
    %267 = vector.shape_cast %266 : vector<1x8x128xf32> to vector<8x128xf32>
    %cst_86 = arith.constant dense<0.000000e+00> : vector<8x128xf32>
    %268 = tpu.matmul %260, %20, %cst_86 {dimension_numbers = #tpu.dot_dimension_numbers<[1], [0], [0], [1], [0, 0, 1, 1], [], []>} : vector<8x32xf32>, vector<32x128xf32>, vector<8x128xf32> -> vector<8x128xf32>
    %269 = arith.addf %267, %268 : vector<8x128xf32>
    %270 = arith.negf %269 : vector<8x128xf32>
    %271 = math.exp %270 : vector<8x128xf32>
    %cst_87 = arith.constant 1.000000e+00 : f32
    %272 = vector.broadcast %cst_87 : f32 to vector<8x128xf32>
    %273 = arith.addf %272, %271 : vector<8x128xf32>
    %274 = arith.divf %272, %273 : vector<8x128xf32>
    %275 = math.tanh %269 : vector<8x128xf32>
    %276 = vector.extract_strided_slice %274 {offsets = [0, 0], sizes = [8, 32], strides = [1, 1]} : vector<8x128xf32> to vector<8x32xf32>
    %277 = vector.extract_strided_slice %274 {offsets = [0, 32], sizes = [8, 32], strides = [1, 1]} : vector<8x128xf32> to vector<8x32xf32>
    %278 = vector.extract_strided_slice %275 {offsets = [0, 64], sizes = [8, 32], strides = [1, 1]} : vector<8x128xf32> to vector<8x32xf32>
    %279 = vector.extract_strided_slice %274 {offsets = [0, 96], sizes = [8, 32], strides = [1, 1]} : vector<8x128xf32> to vector<8x32xf32>
    %280 = arith.mulf %277, %258 : vector<8x32xf32>
    %281 = arith.mulf %276, %278 : vector<8x32xf32>
    %282 = arith.addf %280, %281 : vector<8x32xf32>
    %283 = math.tanh %282 : vector<8x32xf32>
    %284 = arith.mulf %279, %283 : vector<8x32xf32>
    %285 = arith.index_cast %c10_i32 : i32 to index
    %c0_88 = arith.constant 0 : index
    %c0_89 = arith.constant 0 : index
    %286 = vector.load %arg11[%285, %c0_88, %c0_89] : memref<12x8x32xf32, #tpu.memory_space<vmem>>, vector<1x8x32xf32>
    %287 = vector.shape_cast %286 : vector<1x8x32xf32> to vector<8x32xf32>
    %288 = vector.shape_cast %284 : vector<8x32xf32> to vector<1x8x32xf32>
    tpu.vector_store %arg11[%285, %c0_88, %c0_89], %288 {strides = array<i32>} : memref<12x8x32xf32, #tpu.memory_space<vmem>>, vector<1x8x32xf32>,
    %c11_i32 = arith.constant 11 : i32
    %289 = arith.index_cast %c11_i32 : i32 to index
    %c0_90 = arith.constant 0 : index
    %c0_91 = arith.constant 0 : index
    %290 = vector.load %arg10[%289, %c0_90, %c0_91] : memref<12x8x128xf32, #tpu.memory_space<vmem>>, vector<1x8x128xf32>
    %291 = vector.shape_cast %290 : vector<1x8x128xf32> to vector<8x128xf32>
    %cst_92 = arith.constant dense<0.000000e+00> : vector<8x128xf32>
    %292 = tpu.matmul %284, %20, %cst_92 {dimension_numbers = #tpu.dot_dimension_numbers<[1], [0], [0], [1], [0, 0, 1, 1], [], []>} : vector<8x32xf32>, vector<32x128xf32>, vector<8x128xf32> -> vector<8x128xf32>
    %293 = arith.addf %291, %292 : vector<8x128xf32>
    %294 = arith.negf %293 : vector<8x128xf32>
    %295 = math.exp %294 : vector<8x128xf32>
    %cst_93 = arith.constant 1.000000e+00 : f32
    %296 = vector.broadcast %cst_93 : f32 to vector<8x128xf32>
    %297 = arith.addf %296, %295 : vector<8x128xf32>
    %298 = arith.divf %296, %297 : vector<8x128xf32>
    %299 = math.tanh %293 : vector<8x128xf32>
    %300 = vector.extract_strided_slice %298 {offsets = [0, 0], sizes = [8, 32], strides = [1, 1]} : vector<8x128xf32> to vector<8x32xf32>
    %301 = vector.extract_strided_slice %298 {offsets = [0, 32], sizes = [8, 32], strides = [1, 1]} : vector<8x128xf32> to vector<8x32xf32>
    %302 = vector.extract_strided_slice %299 {offsets = [0, 64], sizes = [8, 32], strides = [1, 1]} : vector<8x128xf32> to vector<8x32xf32>
    %303 = vector.extract_strided_slice %298 {offsets = [0, 96], sizes = [8, 32], strides = [1, 1]} : vector<8x128xf32> to vector<8x32xf32>
    %304 = arith.mulf %301, %282 : vector<8x32xf32>
    %305 = arith.mulf %300, %302 : vector<8x32xf32>
    %306 = arith.addf %304, %305 : vector<8x32xf32>
    %307 = math.tanh %306 : vector<8x32xf32>
    %308 = arith.mulf %303, %307 : vector<8x32xf32>
    %309 = arith.index_cast %c11_i32 : i32 to index
    %c0_94 = arith.constant 0 : index
    %c0_95 = arith.constant 0 : index
    %310 = vector.load %arg11[%309, %c0_94, %c0_95] : memref<12x8x32xf32, #tpu.memory_space<vmem>>, vector<1x8x32xf32>
    %311 = vector.shape_cast %310 : vector<1x8x32xf32> to vector<8x32xf32>
    %312 = vector.shape_cast %308 : vector<8x32xf32> to vector<1x8x32xf32>
    tpu.vector_store %arg11[%309, %c0_94, %c0_95], %312 {strides = array<i32>} : memref<12x8x32xf32, #tpu.memory_space<vmem>>, vector<1x8x32xf32>,
    %c12_i32 = arith.constant 12 : i32
    %c0_96 = arith.constant 0 : index
    %c0_97 = arith.constant 0 : index
    %c0_98 = arith.constant 0 : index
    %313 = vector.load %arg11[%c0_96, %c0_97, %c0_98] : memref<12x8x32xf32, #tpu.memory_space<vmem>>, vector<12x8x32xf32>
    %314 = vector.shape_cast %313 : vector<12x8x32xf32> to vector<96x32xf32>
    %c0_99 = arith.constant 0 : index
    %c0_100 = arith.constant 0 : index
    %315 = vector.load %arg6[%c0_99, %c0_100] : memref<32x2xf32, #tpu.memory_space<vmem>>, vector<32x2xf32>
    %cst_101 = arith.constant dense<0.000000e+00> : vector<96x2xf32>
    %316 = tpu.matmul %314, %315, %cst_101 {dimension_numbers = #tpu.dot_dimension_numbers<[1], [0], [0], [1], [0, 0, 1, 1], [], []>} : vector<96x32xf32>, vector<32x2xf32>, vector<96x2xf32> -> vector<96x2xf32>
    %c0_102 = arith.constant 0 : index
    %c0_103 = arith.constant 0 : index
    %317 = vector.load %arg7[%c0_102, %c0_103] : memref<1x2xf32, #tpu.memory_space<vmem>>, vector<1x2xf32>
    %318 = vector.broadcast %317 : vector<1x2xf32> to vector<96x2xf32>
    %319 = arith.addf %316, %318 : vector<96x2xf32>
    %320 = tpu.iota {dimensions = array<i32: 1>} : vector<96x2xi32>
    %c0_i32_104 = arith.constant 0 : i32
    %321 = vector.broadcast %c0_i32_104 : i32 to vector<96x2xi32>
    %322 = arith.cmpi eq, %320, %321 : vector<96x2xi32>
    %cst_105 = arith.constant 0.000000e+00 : f32
    %323 = vector.broadcast %cst_105 : f32 to vector<96x2xf32>
    %324 = arith.maximumf %319, %323 : vector<96x2xf32>
    %325 = vector.broadcast %cst_105 : f32 to vector<96x2xf32>
    %326 = arith.subf %319, %325 : vector<96x2xf32>
    %327 = arith.cmpf one, %326, %326 : vector<96x2xf32>
    %328 = vector.broadcast %cst_105 : f32 to vector<96x2xf32>
    %329 = arith.addf %319, %328 : vector<96x2xf32>
    %330 = math.absf %326 : vector<96x2xf32>
    %cst_106 = arith.constant 0.000000e+00 : f32
    %331 = vector.broadcast %cst_106 : f32 to vector<96x2xf32>
    %332 = arith.subf %331, %330 : vector<96x2xf32>
    %333 = math.exp %332 : vector<96x2xf32>
    %334 = math.log1p %333 : vector<96x2xf32>
    %335 = arith.addf %324, %334 : vector<96x2xf32>
    %336 = arith.select %327, %329, %335 : vector<96x2xi1>, vector<96x2xf32>
    %cst_107 = arith.constant 9.99999997E-7 : f32
    %337 = vector.broadcast %cst_107 : f32 to vector<96x2xf32>
    %338 = arith.addf %336, %337 : vector<96x2xf32>
    %339 = arith.select %322, %319, %338 : vector<96x2xi1>, vector<96x2xf32>
    %340 = vector.shape_cast %339 : vector<96x2xf32> to vector<12x8x2xf32>
    %c0_108 = arith.constant 0 : index
    %c0_109 = arith.constant 0 : index
    %c0_110 = arith.constant 0 : index
    %341 = vector.load %arg9[%c0_108, %c0_109, %c0_110] : memref<12x8x2xf32, #tpu.memory_space<vmem>>, vector<12x8x2xf32>
    tpu.vector_store %arg9[%c0_108, %c0_109, %c0_110], %340 {strides = array<i32>} : memref<12x8x2xf32, #tpu.memory_space<vmem>>, vector<12x8x2xf32>,
    return
  }
}

</mosaic_0001>

<bundles_post_ra>
// kernel: tpu_custom_call.1
= control target key start
LH: loop header
LB: loop body
LE: loop exit
PB: predicated region body
PF: predicated region fallthrough
CT: control target
= control target key end

     0   :  { %v1694_v0 = vmov 0   ;;  %vm204_vm0 = vcmask 1043456   ;;  %vm294_vm1 = vcmask 261120   ;;  %s1695_s24 = smov 32   ;;  %v55_v10 = vlaneseq  ;;  %s1696_s29 = smov 64   ;;  %s2285_s1 = inlined_call_operand.vmem [shape: f32[12,8,1], index: 1, kind: input, shape index: {}]   ;;  %s2286_s4 = inlined_call_operand.vmem [shape: f32[32,128], index: 4, kind: input, shape index: {}]   ;;  %s2287_s3 = inlined_call_operand.vmem [shape: f32[4,128], index: 3, kind: input, shape index: {}]   ;;  %s2288_s2 = inlined_call_operand.vmem [shape: f32[2,8,32], index: 2, kind: input, shape index: {}]   ;;  %s2289_s0 = inlined_call_operand.vmem [shape: f32[12,8,4], index: 0, kind: input, shape index: {}]   ;;  %s2290_s8 = inlined_call_operand.vmem [shape: f32[12,8,4], index: 8, kind: output, shape index: {0}]   ;;  %s2291_s5 = inlined_call_operand.vmem [shape: f32[8,128], index: 5, kind: input, shape index: {}]   ;;  %s2292_s6 = inlined_call_operand.vmem [shape: f32[32,2], index: 6, kind: input, shape index: {}]   ;;  %s2293_s7 = inlined_call_operand.vmem [shape: f32[1,2], index: 7, kind: input, shape index: {}]   ;;  %s2294_s9 = inlined_call_operand.vmem [shape: f32[12,8,2], index: 9, kind: output, shape index: {1}]  }
   0x1   :  { %1545 = vset.pattern.permute.xlu0 %v1694_v0  ;;  %v43_v1 = vld [vmem:[%s2285_s1] sm:$0xff]  ;;  %v1753_v2 = vld [vmem:[%s2286_s4 + $0x18] sm:$0xff]  ;;  %1546 = vset.pattern.permute.xlu1 %v1694_v0  ;;  %v1760_v4 = vld [vmem:[%s2286_s4 + $0x10] sm:$0xff]  ;;  %vm154_vm3 = vcmask 31744  }
   0x2   :  { %v58_v3 = vadd.f32 1.0, %v43_v1  ;;  %310 = vmatpush.msra.mxu1 %v1753_v2  ;;  %381 = vmatpush.msra.mxu2 %v1753_v2  ;;  %v167_v5 = vld [vmem:[%s2287_s3] sm:$0xf]  ;;  %v1769_v6 = vld [vmem:[%s2286_s4 + $0x8] sm:$0xff]  ;;  %v1805_v11 = vand.u32 127, %v55_v10 }
   0x3   :  { %1547 = vset.pattern.permute.xlu2 %v1694_v0  ;;  %1483 = vmatpush.msk.msra.mxu0 %vm204_vm0, %v167_v5  ;;  %v1777_v7 = vld [vmem:[%s2286_s4] sm:$0xff]  ;;  %v1496_v9 = vld [vmem:[%s2288_s2 + $0x8] sm:$0xff] }
   0x4   :  { %72 = vperm.xlu0 %1545, %v58_v3   ;;  %311 = vmatpush.msra.mxu1 %v1760_v4  ;;  %v290_v8 = vld [vmem:[%s2288_s2] sm:$0xff]  ;;  %vm57_vm2 = vcmp.eq.s32.totalorder %v1805_v11, 0  ;;  %v44_v22 = vld [vmem:[%s2285_s1 + $0x8] sm:$0xff] }
   0x5   :  { %382 = vmatpush.msra.mxu2 %v1760_v4  ;;  %1533 = vmatpush.msk.msra.mxu3 %vm204_vm0, %v167_v5  ;;  %v31_v12 = vld [vmem:[%s2289_s0] sm:$0xff]  ;;  %v59_v23 = vadd.f32 1.0, %v44_v22  ;;  %v32_v39 = vld [vmem:[%s2289_s0 + $0x8] sm:$0xff]  ;;  %v41_v22 = vld [vmem:[%s2289_s0 + $0x50] sm:$0xff] }
   0x6   :  { %312 = vmatpush.msra.mxu1 %v1769_v6  ;;  %340 = vrot.lane.b32.xlu1 %v1496_v9, %s1695_s24  ;;  %v1821_v16 = vld [vmem:[%s2291_s5] sm:$0xff] }
   0x7   :  { %383 = vmatpush.msra.mxu2 %v1769_v6  ;;  %449 = vmatpush.msrb.mxu3 %v1753_v2 }
   0x8   :  { %313 = vmatpush.msra.mxu1 %v1777_v7 }
   0x9   :  { %1497 = vmatmul.msk.f32.vlgmr.msra.gmra.mxu1 %vm294_vm1, %v290_v8  ;;  %384 = vmatpush.msra.mxu2 %v1777_v7 }
   0xa   :  { %450 = vmatpush.msrb.mxu3 %v1760_v4  ;;  %517 = vmatpush.msrb.mxu1 %v1753_v2 }
   0xb   :  { %585 = vmatpush.msrb.mxu2 %v1753_v2 }
   0xc   :  { %451 = vmatpush.msrb.mxu3 %v1769_v6  ;;  %518 = vmatpush.msrb.mxu1 %v1760_v4 }
   0xd   :  { %586 = vmatpush.msrb.mxu2 %v1760_v4 }
   0xe   :  { %452 = vmatpush.msrb.mxu3 %v1777_v7  ;;  %519 = vmatpush.msrb.mxu1 %v1769_v6 }
   0xf   :  { %587 = vmatpush.msrb.mxu2 %v1769_v6 }
  0x10   :  { %520 = vmatpush.msrb.mxu1 %v1777_v7 }
  0x11   :  { %588 = vmatpush.msrb.mxu2 %v1777_v7 }
  0x12   :  { %721 = vmatpush.msra.mxu1 %v1753_v2 }
  0x14   :  { %722 = vmatpush.msra.mxu1 %v1760_v4 }
  0x16   :  { %723 = vmatpush.msra.mxu1 %v1769_v6 }
  0x18   :  { %724 = vmatpush.msra.mxu1 %v1777_v7 }
  0x76   :  { %v73_v13 = vpop.permute.xlu0 %72 }
  0x77   :  { %v130_v14 = vmul.f32 %v73_v13, %v31_v12 }
  0x78   :  { %v341_v43 = vpop.permute.xlu1 %340 }
  0x79   :  { %v142_v15 = vsel %vm57_vm2, %v130_v14, %v31_v12  ;;  %v53_v12 = vld [vmem:[%s2285_s1 + $0x50] sm:$0xff] }
  0x7a   :  { %155 = vst.msk [vmem:[%s2290_s8] sm:$0xff] %vm154_vm3, %v142_v15  ;;  %1484 = vmatmul.msk.f32.vlgmr.msra.gmra.mxu0 %vm154_vm3, %v142_v15  ;;  %v68_v13 = vadd.f32 1.0, %v53_v12  ;;  %v45_v14 = vld [vmem:[%s2285_s1 + $0x10] sm:$0xff] }
  0x7b   :  { %v60_v15 = vadd.f32 1.0, %v45_v14 }
  0x86   :  { %v315_v18 = vpop.f32.mrf.mxu1 }
  0xf7   :  { %v225_v17 = vpop.f32.mrf.mxu0 }
  0xf8   :  { %v262_v19 = vadd.f32 %v1821_v16, %v225_v17 }
  0xfa   :  { %v318_v20 = vadd.f32 %v315_v18, %v262_v19 }
  0xfc   :  { %1549 = vtanh.f32 %v318_v20  ;;  %v1498_v24 = vmul.f32 -1.442695, %v318_v20 }
  0xfe   :  { %1551 = vpow2.f32 %v1498_v24 }
 0x102   :  { %v1550_v21 = vpop.eup %1549 }
 0x103   :  { %345 = vrot.lane.b32.xlu0 %v1550_v21, %s1696_s29  ;;  %v54_v21 = vld [vmem:[%s2285_s1 + $0x58] sm:$0xff] }
 0x104   :  { %v1552_v25 = vpop.eup %1551  ;;  %v69_v24 = vadd.f32 1.0, %v54_v21 }
 0x105   :  { %v322_v26 = vadd.f32 1.0, %v1552_v25 }
 0x107   :  { %1553 = vrcp.f32 %v322_v26  ;;  %v334_v32 = vand.u32 2147483648, %v322_v26  ;;  %vm328_vm5 = vweird.f32 %v322_v26  ;;  %v332_v33 = vand.u32 2147483647, %v322_v26 }
 0x109   :  { %v335_v35 = vor.u32 1.1754944e-38, %v334_v32  ;;  %vm333_vm7 = vcmp.eq.f32.partialorder %v332_v33, 8.507059e+37  ;;  %v42_v33 = vld [vmem:[%s2289_s0 + $0x58] sm:$0xff] }
 0x10b   :  { %77 = vperm.xlu0 %1545, %v59_v23  }
 0x10d   :  { %v1554_v27 = vpop.eup %1553 }
 0x10e   :  { %v324_v28 = vmul.f32 %v1554_v27, %v322_v26  ;;  %vm329_vm4 = vweird.f32 %v1554_v27 }
 0x10f   :  { %vm330_vm6 = vmor %vm328_vm5, %vm329_vm4 }
 0x110   :  { %v325_v29 = vsub.f32 1.0, %v324_v28 }
 0x112   :  { %v326_v30 = vmul.f32 %v1554_v27, %v325_v29 }
 0x114   :  { %v327_v31 = vadd.f32 %v1554_v27, %v326_v30 }
 0x116   :  { %v331_v34 = vsel %vm330_vm6, %v1554_v27, %v327_v31  ;;  %v33_v27 = vld [vmem:[%s2289_s0 + $0x10] sm:$0xff] }
 0x117   :  { %v336_v36 = vsel %vm333_vm7, %v335_v35, %v331_v34 }
 0x118   :  { %v343_v44 = vmul.f32 %v341_v43, %v336_v36 }
 0x175   :  { %v346_v37 = vpop.permute.xlu0 %345 }
 0x176   :  { %v348_v38 = vmul.f32 %v346_v37, %v336_v36 }
 0x178   :  { %350 = vrot.lane.b32.xlu1 %v348_v38, %s1695_s24 }
 0x17d   :  { %v78_v40 = vpop.permute.xlu0 %77 }
 0x17e   :  { %v131_v41 = vmul.f32 %v78_v40, %v32_v39 }
 0x180   :  { %v143_v42 = vsel %vm57_vm2, %v131_v41, %v32_v39 }
 0x181   :  { %156 = vst.msk [vmem:[%s2290_s8 + $0x8] sm:$0xff] %vm154_vm3, %v143_v42  ;;  %1485 = vmatmul.msk.f32.gmra.mxu0 %vm154_vm3, %v143_v42 }
 0x1ea   :  { %v351_v45 = vpop.permute.xlu1 %350 }
 0x1eb   :  { %v353_v46 = vadd.f32 %v351_v45, %v343_v44  ;;  %v46_v45 = vld [vmem:[%s2285_s1 + $0x18] sm:$0xff] }
 0x1ed   :  { %1555 = vtanh.f32 %v353_v46 }
 0x1f3   :  { %v1556_v47 = vpop.eup %1555 }
 0x1f4   :  { %356 = vrot.lane.b32.xlu2 %v1556_v47, %s1696_s29 }
 0x1fe   :  { %v228_v51 = vpop.f32.mrf.mxu0 }
 0x1ff   :  { %v263_v52 = vadd.f32 %v1821_v16, %v228_v51 }
 0x24e   :  { %v357_v48 = vpop.permute.xlu2 %356 }
 0x24f   :  { %v359_v49 = vmul.f32 %v357_v48, %v336_v36 }
 0x251   :  { %361 = vrot.lane.b32.xlu2 %v359_v49, %s1695_s24 }
 0x2ab   :  { %v362_v50 = vpop.permute.xlu2 %361 }
 0x2ac   :  { %364 = vst.msk [vmem:[#allocation3] sm:$0xff] %vm294_vm1, %v362_v50  ;;  %1499 = vmatmul.msk.f32.vlgmr.msra.gmra.mxu2 %vm294_vm1, %v362_v50 }
 0x2ad   :  { %789 = vmatpush.msra.mxu2 %v1753_v2 }
 0x2af   :  { %790 = vmatpush.msra.mxu2 %v1760_v4 }
 0x2b1   :  { %791 = vmatpush.msra.mxu2 %v1769_v6 }
 0x2b3   :  { %792 = vmatpush.msra.mxu2 %v1777_v7 }
 0x32f   :  { %v386_v53 = vpop.f32.mrf.mxu2 }
 0x330   :  { %v389_v54 = vadd.f32 %v386_v53, %v263_v52 }
 0x332   :  { %1557 = vtanh.f32 %v389_v54  ;;  %v1500_v56 = vmul.f32 -1.442695, %v389_v54 }
 0x334   :  { %1559 = vpow2.f32 %v1500_v56 }
 0x338   :  { %v1558_v55 = vpop.eup %1557 }
 0x339   :  { %412 = vrot.lane.b32.xlu1 %v1558_v55, %s1696_s29 }
 0x33a   :  { %v1560_v57 = vpop.eup %1559 }
 0x33b   :  { %v393_v58 = vadd.f32 1.0, %v1560_v57 }
 0x33d   :  { %1561 = vrcp.f32 %v393_v58  ;;  %v405_v0 = vand.u32 2147483648, %v393_v58  ;;  %vm399_vm9 = vweird.f32 %v393_v58  ;;  %v403_v1 = vand.u32 2147483647, %v393_v58 }
 0x33f   :  { %v406_v5 = vor.u32 1.1754944e-38, %v405_v0  ;;  %vm404_vm11 = vcmp.eq.f32.partialorder %v403_v1, 8.507059e+37 }
 0x341   :  { %122 = vperm.xlu1 %1546, %v68_v13  }
 0x343   :  { %v1562_v59 = vpop.eup %1561 }
 0x344   :  { %v395_v60 = vmul.f32 %v1562_v59, %v393_v58  ;;  %vm400_vm8 = vweird.f32 %v1562_v59 }
 0x345   :  { %vm401_vm10 = vmor %vm399_vm9, %vm400_vm8 }
 0x346   :  { %v396_v61 = vsub.f32 1.0, %v395_v60 }
 0x348   :  { %v397_v62 = vmul.f32 %v1562_v59, %v396_v61 }
 0x349   :  { %82 = vperm.xlu1 %1546, %v60_v15  }
 0x34a   :  { %v398_v63 = vadd.f32 %v1562_v59, %v397_v62  ;;  %v34_v62 = vld [vmem:[%s2289_s0 + $0x18] sm:$0xff] }
 0x34c   :  { %v402_v3 = vsel %vm401_vm10, %v1562_v59, %v398_v63 }
 0x34d   :  { %v407_v9 = vsel %vm404_vm11, %v406_v5, %v402_v3 }
 0x34e   :  { %v410_v17 = vmul.f32 %v407_v9, %v353_v46  ;;  %v61_v46 = vadd.f32 1.0, %v46_v45 }
 0x3ab   :  { %v413_v8 = vpop.permute.xlu1 %412 }
 0x3ac   :  { %v415_v10 = vmul.f32 %v413_v8, %v407_v9 }
 0x3ae   :  { %417 = vrot.lane.b32.xlu2 %v415_v10, %s1695_s24 }
 0x3b3   :  { %v123_v23 = vpop.permute.xlu1 %122 }
 0x3b4   :  { %v140_v25 = vmul.f32 %v123_v23, %v41_v22 }
 0x3b6   :  { %127 = vperm.xlu2 %1547, %v69_v24   ;;  %v152_v26 = vsel %vm57_vm2, %v140_v25, %v41_v22 }
 0x3b7   :  { %165 = vst.msk [vmem:[%s2290_s8 + $0x50] sm:$0xff] %vm154_vm3, %v152_v26  ;;  %1494 = vmatmul.msk.f32.vlgmr.msra.gmra.mxu3 %vm154_vm3, %v152_v26 }
 0x3b8   :  { %653 = vmatpush.msra.mxu3 %v1753_v2 }
 0x3ba   :  { %654 = vmatpush.msra.mxu3 %v1760_v4 }
 0x3bb   :  { %v83_v28 = vpop.permute.xlu1 %82 }
 0x3bc   :  { %v132_v29 = vmul.f32 %v83_v28, %v33_v27  ;;  %655 = vmatpush.msra.mxu3 %v1769_v6 }
 0x3be   :  { %v144_v30 = vsel %vm57_vm2, %v132_v29, %v33_v27  ;;  %656 = vmatpush.msra.mxu3 %v1777_v7 }
 0x3bf   :  { %157 = vst.msk [vmem:[%s2290_s8 + $0x10] sm:$0xff] %vm154_vm3, %v144_v30  ;;  %1486 = vmatmul.msk.f32.gmra.mxu0 %vm154_vm3, %v144_v30 }
 0x408   :  { %v418_v18 = vpop.permute.xlu2 %417 }
 0x409   :  { %v1856_v19 = vadd.f32 %v418_v18, %v410_v17 }
 0x40b   :  { %1563 = vtanh.f32 %v1856_v19 }
 0x410   :  { %v128_v34 = vpop.permute.xlu2 %127 }
 0x411   :  { %v1564_v20 = vpop.eup %1563  ;;  %v141_v35 = vmul.f32 %v128_v34, %v42_v33 }
 0x412   :  { %423 = vrot.lane.b32.xlu0 %v1564_v20, %s1696_s29 }
 0x413   :  { %v153_v36 = vsel %vm57_vm2, %v141_v35, %v42_v33  ;;  %v47_v35 = vld [vmem:[%s2285_s1 + $0x20] sm:$0xff] }
 0x414   :  { %166 = vst.msk [vmem:[%s2290_s8 + $0x58] sm:$0xff] %vm154_vm3, %v153_v36  ;;  %1495 = vmatmul.msk.f32.gmra.mxu3 %vm154_vm3, %v153_v36  ;;  %v62_v36 = vadd.f32 1.0, %v47_v35 }
 0x43a   :  { %v1904_v38 = vpop.f32.mrf.mxu3 }
 0x43c   :  { %v231_v40 = vpop.f32.mrf.mxu0 }
 0x43d   :  { %v264_v41 = vadd.f32 %v1821_v16, %v231_v40 }
 0x484   :  { %v424_v31 = vpop.permute.xlu0 %423 }
 0x485   :  { %v426_v32 = vmul.f32 %v424_v31, %v407_v9 }
 0x487   :  { %428 = vrot.lane.b32.xlu0 %v426_v32, %s1695_s24 }
 0x497   :  { %v1906_v39 = vpop.f32.mrf.mxu3 }
 0x4f9   :  { %v429_v37 = vpop.permute.xlu0 %428 }
 0x4fa   :  { %432 = vst.msk [vmem:[#allocation3 + $0x8] sm:$0xff] %vm294_vm1, %v429_v37  ;;  %1501 = vmatmul.msk.f32.vlgmr.msrb.gmra.mxu3 %vm294_vm1, %v429_v37 }
 0x4fb   :  { %857 = vmatpush.msrb.mxu3 %v1753_v2 }
 0x4fd   :  { %858 = vmatpush.msrb.mxu3 %v1760_v4 }
 0x4ff   :  { %859 = vmatpush.msrb.mxu3 %v1769_v6 }
 0x501   :  { %860 = vmatpush.msrb.mxu3 %v1777_v7 }
 0x57d   :  { %v454_v42 = vpop.f32.mrf.mxu3 }
 0x57e   :  { %v457_v43 = vadd.f32 %v454_v42, %v264_v41  ;;  %v35_v42 = vld [vmem:[%s2289_s0 + $0x20] sm:$0xff] }
 0x580   :  { %1565 = vtanh.f32 %v457_v43  ;;  %v1502_v47 = vmul.f32 -1.442695, %v457_v43 }
 0x582   :  { %1567 = vpow2.f32 %v1502_v47 }
 0x586   :  { %v1566_v44 = vpop.eup %1565 }
 0x587   :  { %480 = vrot.lane.b32.xlu2 %v1566_v44, %s1696_s29 }
 0x588   :  { %v1568_v48 = vpop.eup %1567 }
 0x589   :  { %v461_v49 = vadd.f32 1.0, %v1568_v48 }
 0x58b   :  { %1569 = vrcp.f32 %v461_v49  ;;  %v473_v55 = vand.u32 2147483648, %v461_v49  ;;  %vm467_vm13 = vweird.f32 %v461_v49  ;;  %v471_v56 = vand.u32 2147483647, %v461_v49 }
 0x58d   :  { %v474_v58 = vor.u32 1.1754944e-38, %v473_v55  ;;  %vm472_vm15 = vcmp.eq.f32.partialorder %v471_v56, 8.507059e+37 }
 0x58f   :  { %87 = vperm.xlu2 %1547, %v61_v46  }
 0x591   :  { %v1570_v50 = vpop.eup %1569 }
 0x592   :  { %v463_v51 = vmul.f32 %v1570_v50, %v461_v49  ;;  %vm468_vm12 = vweird.f32 %v1570_v50 }
 0x593   :  { %vm469_vm14 = vmor %vm467_vm13, %vm468_vm12 }
 0x594   :  { %v464_v52 = vsub.f32 1.0, %v463_v51 }
 0x596   :  { %v465_v53 = vmul.f32 %v1570_v50, %v464_v52 }
 0x598   :  { %v466_v54 = vadd.f32 %v1570_v50, %v465_v53 }
 0x59a   :  { %v470_v57 = vsel %vm469_vm14, %v1570_v50, %v466_v54 }
 0x59b   :  { %v475_v60 = vsel %vm472_vm15, %v474_v58, %v470_v57 }
 0x59c   :  { %v478_v3 = vmul.f32 %v475_v60, %v1856_v19 }
 0x5e1   :  { %v481_v59 = vpop.permute.xlu2 %480 }
 0x5e2   :  { %v483_v61 = vmul.f32 %v481_v59, %v475_v60 }
 0x5e4   :  { %485 = vrot.lane.b32.xlu0 %v483_v61, %s1695_s24 }
 0x5e9   :  { %v88_v63 = vpop.permute.xlu2 %87 }
 0x5ea   :  { %v133_v0 = vmul.f32 %v88_v63, %v34_v62 }
 0x5ec   :  { %v145_v1 = vsel %vm57_vm2, %v133_v0, %v34_v62 }
 0x5ed   :  { %158 = vst.msk [vmem:[%s2290_s8 + $0x18] sm:$0xff] %vm154_vm3, %v145_v1  ;;  %1487 = vmatmul.msk.f32.gmra.mxu0 %vm154_vm3, %v145_v1 }
 0x656   :  { %v486_v5 = vpop.permute.xlu0 %485 }
 0x657   :  { %v488_v8 = vadd.f32 %v486_v5, %v478_v3 }
 0x659   :  { %1571 = vtanh.f32 %v488_v8 }
 0x65f   :  { %v1572_v9 = vpop.eup %1571 }
 0x660   :  { %491 = vrot.lane.b32.xlu1 %v1572_v9, %s1696_s29 }
 0x66a   :  { %v234_v14 = vpop.f32.mrf.mxu0 }
 0x66b   :  { %v265_v15 = vadd.f32 %v1821_v16, %v234_v14 }
 0x6d2   :  { %v492_v10 = vpop.permute.xlu1 %491 }
 0x6d3   :  { %v494_v12 = vmul.f32 %v492_v10, %v475_v60  ;;  %v48_v10 = vld [vmem:[%s2285_s1 + $0x28] sm:$0xff] }
 0x6d5   :  { %496 = vrot.lane.b32.xlu0 %v494_v12, %s1695_s24  ;;  %v63_v12 = vadd.f32 1.0, %v48_v10 }
 0x747   :  { %v497_v13 = vpop.permute.xlu0 %496 }
 0x748   :  { %500 = vst.msk [vmem:[#allocation3 + $0x10] sm:$0xff] %vm294_vm1, %v497_v13  ;;  %1503 = vmatmul.msk.f32.vlgmr.msrb.gmra.mxu1 %vm294_vm1, %v497_v13 }
 0x749   :  { %925 = vmatpush.msrb.mxu1 %v1753_v2 }
 0x74b   :  { %926 = vmatpush.msrb.mxu1 %v1760_v4 }
 0x74d   :  { %927 = vmatpush.msrb.mxu1 %v1769_v6 }
 0x74f   :  { %928 = vmatpush.msrb.mxu1 %v1777_v7 }
 0x7c5   :  { %v522_v17 = vpop.f32.mrf.mxu1 }
 0x7c6   :  { %v525_v18 = vadd.f32 %v522_v17, %v265_v15  ;;  %v36_v17 = vld [vmem:[%s2289_s0 + $0x28] sm:$0xff] }
 0x7c8   :  { %1573 = vtanh.f32 %v525_v18  ;;  %v1504_v20 = vmul.f32 -1.442695, %v525_v18 }
 0x7ca   :  { %1575 = vpow2.f32 %v1504_v20 }
 0x7ce   :  { %v1574_v19 = vpop.eup %1573 }
 0x7cf   :  { %548 = vrot.lane.b32.xlu1 %v1574_v19, %s1696_s29 }
 0x7d0   :  { %v1576_v21 = vpop.eup %1575 }
 0x7d1   :  { %v529_v22 = vadd.f32 1.0, %v1576_v21 }
 0x7d3   :  { %1577 = vrcp.f32 %v529_v22  ;;  %v541_v28 = vand.u32 2147483648, %v529_v22  ;;  %vm535_vm4 = vweird.f32 %v529_v22  ;;  %v539_v29 = vand.u32 2147483647, %v529_v22 }
 0x7d5   :  { %v542_v31 = vor.u32 1.1754944e-38, %v541_v28  ;;  %vm540_vm6 = vcmp.eq.f32.partialorder %v539_v29, 8.507059e+37 }
 0x7d9   :  { %v1578_v23 = vpop.eup %1577 }
 0x7da   :  { %v531_v24 = vmul.f32 %v1578_v23, %v529_v22  ;;  %vm536_vm0 = vweird.f32 %v1578_v23 }
 0x7db   :  { %vm537_vm5 = vmor %vm535_vm4, %vm536_vm0 }
 0x7dc   :  { %v532_v25 = vsub.f32 1.0, %v531_v24 }
 0x7de   :  { %v533_v26 = vmul.f32 %v1578_v23, %v532_v25 }
 0x7e0   :  { %v534_v27 = vadd.f32 %v1578_v23, %v533_v26 }
 0x7e2   :  { %v538_v30 = vsel %vm537_vm5, %v1578_v23, %v534_v27 }
 0x7e3   :  { %v543_v33 = vsel %vm540_vm6, %v542_v31, %v538_v30  ;;  %v49_v30 = vld [vmem:[%s2285_s1 + $0x30] sm:$0xff] }
 0x7e4   :  { %v546_v37 = vmul.f32 %v543_v33, %v488_v8 }
 0x841   :  { %v549_v32 = vpop.permute.xlu1 %548 }
 0x842   :  { %v551_v34 = vmul.f32 %v549_v32, %v543_v33 }
 0x844   :  { %553 = vrot.lane.b32.xlu2 %v551_v34, %s1695_s24 }
 0x84c   :  { %92 = vperm.xlu2 %1547, %v62_v36  }
 0x89e   :  { %v554_v40 = vpop.permute.xlu2 %553 }
 0x89f   :  { %v556_v41 = vadd.f32 %v554_v40, %v546_v37 }
 0x8a1   :  { %1579 = vtanh.f32 %v556_v41 }
 0x8a6   :  { %v93_v43 = vpop.permute.xlu2 %92 }
 0x8a7   :  { %v1580_v44 = vpop.eup %1579  ;;  %v134_v45 = vmul.f32 %v93_v43, %v35_v42 }
 0x8a8   :  { %559 = vrot.lane.b32.xlu0 %v1580_v44, %s1696_s29 }
 0x8a9   :  { %v146_v46 = vsel %vm57_vm2, %v134_v45, %v35_v42  ;;  %v37_v45 = vld [vmem:[%s2289_s0 + $0x30] sm:$0xff] }
 0x8aa   :  { %159 = vst.msk [vmem:[%s2290_s8 + $0x20] sm:$0xff] %vm154_vm3, %v146_v46  ;;  %1488 = vmatmul.msk.f32.gmra.mxu0 %vm154_vm3, %v146_v46 }
 0x91a   :  { %v560_v47 = vpop.permute.xlu0 %559 }
 0x91b   :  { %v562_v48 = vmul.f32 %v560_v47, %v543_v33 }
 0x91d   :  { %564 = vrot.lane.b32.xlu1 %v562_v48, %s1695_s24 }
 0x927   :  { %v237_v50 = vpop.f32.mrf.mxu0 }
 0x928   :  { %v266_v51 = vadd.f32 %v1821_v16, %v237_v50 }
 0x98f   :  { %v565_v49 = vpop.permute.xlu1 %564 }
 0x990   :  { %568 = vst.msk [vmem:[#allocation3 + $0x18] sm:$0xff] %vm294_vm1, %v565_v49  ;;  %1505 = vmatmul.msk.f32.vlgmr.msrb.gmra.mxu2 %vm294_vm1, %v565_v49 }
 0x991   :  { %993 = vmatpush.msrb.mxu2 %v1753_v2 }
 0x993   :  { %994 = vmatpush.msrb.mxu2 %v1760_v4 }
 0x995   :  { %995 = vmatpush.msrb.mxu2 %v1769_v6 }
 0x997   :  { %996 = vmatpush.msrb.mxu2 %v1777_v7 }
 0xa13   :  { %v590_v52 = vpop.f32.mrf.mxu2 }
 0xa14   :  { %v593_v53 = vadd.f32 %v590_v52, %v266_v51 }
 0xa16   :  { %1581 = vtanh.f32 %v593_v53  ;;  %v1506_v55 = vmul.f32 -1.442695, %v593_v53 }
 0xa18   :  { %1583 = vpow2.f32 %v1506_v55 }
 0xa1c   :  { %v1582_v54 = vpop.eup %1581 }
 0xa1d   :  { %616 = vrot.lane.b32.xlu0 %v1582_v54, %s1696_s29 }
 0xa1e   :  { %v1584_v56 = vpop.eup %1583 }
 0xa1f   :  { %v597_v57 = vadd.f32 1.0, %v1584_v56 }
 0xa21   :  { %1585 = vrcp.f32 %v597_v57  ;;  %v609_v63 = vand.u32 2147483648, %v597_v57  ;;  %vm603_vm8 = vweird.f32 %v597_v57  ;;  %v607_v0 = vand.u32 2147483647, %v597_v57 }
 0xa23   :  { %v610_v3 = vor.u32 1.1754944e-38, %v609_v63  ;;  %vm608_vm10 = vcmp.eq.f32.partialorder %v607_v0, 8.507059e+37 }
 0xa27   :  { %v1586_v58 = vpop.eup %1585 }
 0xa28   :  { %v599_v59 = vmul.f32 %v1586_v58, %v597_v57  ;;  %vm604_vm7 = vweird.f32 %v1586_v58 }
 0xa29   :  { %vm605_vm9 = vmor %vm603_vm8, %vm604_vm7 }
 0xa2a   :  { %v600_v60 = vsub.f32 1.0, %v599_v59 }
 0xa2c   :  { %v601_v61 = vmul.f32 %v1586_v58, %v600_v60 }
 0xa2e   :  { %v602_v62 = vadd.f32 %v1586_v58, %v601_v61 }
 0xa30   :  { %v606_v1 = vsel %vm605_vm9, %v1586_v58, %v602_v62 }
 0xa31   :  { %v611_v8 = vsel %vm608_vm10, %v610_v3, %v606_v1 }
 0xa32   :  { %v614_v13 = vmul.f32 %v611_v8, %v556_v41 }
 0xa8f   :  { %v617_v5 = vpop.permute.xlu0 %616 }
 0xa90   :  { %v619_v9 = vmul.f32 %v617_v5, %v611_v8 }
 0xa92   :  { %621 = vrot.lane.b32.xlu1 %v619_v9, %s1695_s24 }
 0xa9a   :  { %97 = vperm.xlu1 %1546, %v63_v12  }
 0xb04   :  { %v622_v14 = vpop.permute.xlu1 %621 }
 0xb05   :  { %v624_v15 = vadd.f32 %v622_v14, %v614_v13 }
 0xb07   :  { %1587 = vtanh.f32 %v624_v15 }
 0xb0c   :  { %v98_v18 = vpop.permute.xlu1 %97 }
 0xb0d   :  { %v1588_v19 = vpop.eup %1587  ;;  %v135_v20 = vmul.f32 %v98_v18, %v36_v17  ;;  %v50_v18 = vld [vmem:[%s2285_s1 + $0x38] sm:$0xff] }
 0xb0e   :  { %627 = vrot.lane.b32.xlu2 %v1588_v19, %s1696_s29  ;;  %v65_v19 = vadd.f32 1.0, %v50_v18 }
 0xb0f   :  { %v147_v21 = vsel %vm57_vm2, %v135_v20, %v36_v17 }
 0xb10   :  { %160 = vst.msk [vmem:[%s2290_s8 + $0x28] sm:$0xff] %vm154_vm3, %v147_v21  ;;  %1489 = vmatmul.msk.f32.gmra.mxu0 %vm154_vm3, %v147_v21 }
 0xb68   :  { %v628_v22 = vpop.permute.xlu2 %627 }
 0xb69   :  { %v630_v23 = vmul.f32 %v628_v22, %v611_v8 }
 0xb6b   :  { %632 = vrot.lane.b32.xlu0 %v630_v23, %s1695_s24  ;;  %v38_v23 = vld [vmem:[%s2289_s0 + $0x38] sm:$0xff] }
 0xb8d   :  { %v240_v25 = vpop.f32.mrf.mxu0 }
 0xb8e   :  { %v267_v26 = vadd.f32 %v1821_v16, %v240_v25 }
 0xbdd   :  { %v633_v24 = vpop.permute.xlu0 %632 }
 0xbde   :  { %636 = vst.msk [vmem:[#allocation3 + $0x20] sm:$0xff] %vm294_vm1, %v633_v24  ;;  %1507 = vmatmul.msk.f32.vlgmr.msra.gmra.mxu3 %vm294_vm1, %v633_v24 }
 0xbdf   :  { %1061 = vmatpush.msra.mxu3 %v1753_v2  ;;  %v64_v2 = vadd.f32 1.0, %v49_v30 }
 0xbe1   :  { %1062 = vmatpush.msra.mxu3 %v1760_v4 }
 0xbe3   :  { %1063 = vmatpush.msra.mxu3 %v1769_v6 }
 0xbe5   :  { %1064 = vmatpush.msra.mxu3 %v1777_v7 }
 0xc61   :  { %v658_v27 = vpop.f32.mrf.mxu3 }
 0xc62   :  { %v661_v28 = vadd.f32 %v658_v27, %v267_v26 }
 0xc64   :  { %1589 = vtanh.f32 %v661_v28  ;;  %v1508_v4 = vmul.f32 -1.442695, %v661_v28 }
 0xc66   :  { %1591 = vpow2.f32 %v1508_v4 }
 0xc6a   :  { %v1590_v29 = vpop.eup %1589 }
 0xc6b   :  { %684 = vrot.lane.b32.xlu2 %v1590_v29, %s1696_s29 }
 0xc6c   :  { %v1592_v6 = vpop.eup %1591 }
 0xc6d   :  { %v665_v31 = vadd.f32 1.0, %v1592_v6 }
 0xc6f   :  { %1593 = vrcp.f32 %v665_v31  ;;  %v677_v36 = vand.u32 2147483648, %v665_v31  ;;  %vm671_vm12 = vweird.f32 %v665_v31  ;;  %v675_v37 = vand.u32 2147483647, %v665_v31 }
 0xc71   :  { %v678_v41 = vor.u32 1.1754944e-38, %v677_v36  ;;  %vm676_vm14 = vcmp.eq.f32.partialorder %v675_v37, 8.507059e+37 }
 0xc73   :  { %102 = vperm.xlu2 %1547, %v64_v2  }
 0xc75   :  { %v1594_v7 = vpop.eup %1593 }
 0xc76   :  { %v667_v32 = vmul.f32 %v1594_v7, %v665_v31  ;;  %vm672_vm11 = vweird.f32 %v1594_v7 }
 0xc77   :  { %vm673_vm13 = vmor %vm671_vm12, %vm672_vm11 }
 0xc78   :  { %v668_v33 = vsub.f32 1.0, %v667_v32 }
 0xc7a   :  { %v669_v34 = vmul.f32 %v1594_v7, %v668_v33 }
 0xc7c   :  { %v670_v35 = vadd.f32 %v1594_v7, %v669_v34 }
 0xc7e   :  { %v674_v40 = vsel %vm673_vm13, %v1594_v7, %v670_v35 }
 0xc7f   :  { %v679_v43 = vsel %vm676_vm14, %v678_v41, %v674_v40 }
 0xc80   :  { %v682_v49 = vmul.f32 %v679_v43, %v624_v15 }
 0xcc5   :  { %v685_v42 = vpop.permute.xlu2 %684 }
 0xcc6   :  { %v687_v44 = vmul.f32 %v685_v42, %v679_v43 }
 0xcc8   :  { %689 = vrot.lane.b32.xlu0 %v687_v44, %s1695_s24 }
 0xccd   :  { %v103_v46 = vpop.permute.xlu2 %102 }
 0xcce   :  { %v136_v47 = vmul.f32 %v103_v46, %v37_v45 }
 0xcd0   :  { %v148_v48 = vsel %vm57_vm2, %v136_v47, %v37_v45 }
 0xcd1   :  { %161 = vst.msk [vmem:[%s2290_s8 + $0x30] sm:$0xff] %vm154_vm3, %v148_v48  ;;  %1490 = vmatmul.msk.f32.gmra.mxu0 %vm154_vm3, %v148_v48 }
 0xd3a   :  { %v690_v50 = vpop.permute.xlu0 %689 }
 0xd3b   :  { %v692_v51 = vadd.f32 %v690_v50, %v682_v49  ;;  %v51_v49 = vld [vmem:[%s2285_s1 + $0x40] sm:$0xff] }
 0xd3c   :  { %v66_v50 = vadd.f32 1.0, %v51_v49 }
 0xd3d   :  { %1595 = vtanh.f32 %v692_v51 }
 0xd43   :  { %v1596_v52 = vpop.eup %1595 }
 0xd44   :  { %695 = vrot.lane.b32.xlu1 %v1596_v52, %s1696_s29 }
 0xd4e   :  { %v243_v56 = vpop.f32.mrf.mxu0 }
 0xd4f   :  { %v268_v57 = vadd.f32 %v1821_v16, %v243_v56 }
 0xdb6   :  { %v696_v53 = vpop.permute.xlu1 %695 }
 0xdb7   :  { %v698_v54 = vmul.f32 %v696_v53, %v679_v43 }
 0xdb9   :  { %700 = vrot.lane.b32.xlu0 %v698_v54, %s1695_s24  ;;  %v39_v54 = vld [vmem:[%s2289_s0 + $0x40] sm:$0xff] }
 0xe2b   :  { %v701_v55 = vpop.permute.xlu0 %700 }
 0xe2c   :  { %704 = vst.msk [vmem:[#allocation3 + $0x28] sm:$0xff] %vm294_vm1, %v701_v55  ;;  %1509 = vmatmul.msk.f32.vlgmr.msra.gmra.mxu1 %vm294_vm1, %v701_v55 }
 0xea9   :  { %v726_v58 = vpop.f32.mrf.mxu1 }
 0xeaa   :  { %v729_v59 = vadd.f32 %v726_v58, %v268_v57 }
 0xeac   :  { %1597 = vtanh.f32 %v729_v59  ;;  %v1510_v61 = vmul.f32 -1.442695, %v729_v59 }
 0xeae   :  { %1599 = vpow2.f32 %v1510_v61 }
 0xeb2   :  { %v1598_v60 = vpop.eup %1597 }
 0xeb3   :  { %752 = vrot.lane.b32.xlu1 %v1598_v60, %s1696_s29 }
 0xeb4   :  { %v1600_v62 = vpop.eup %1599 }
 0xeb5   :  { %v733_v63 = vadd.f32 1.0, %v1600_v62 }
 0xeb7   :  { %1601 = vrcp.f32 %v733_v63  ;;  %v745_v9 = vand.u32 2147483648, %v733_v63  ;;  %vm739_vm0 = vweird.f32 %v733_v63  ;;  %v743_v10 = vand.u32 2147483647, %v733_v63 }
 0xeb9   :  { %v746_v13 = vor.u32 1.1754944e-38, %v745_v9  ;;  %vm744_vm5 = vcmp.eq.f32.partialorder %v743_v10, 8.507059e+37 }
 0xebd   :  { %v1602_v0 = vpop.eup %1601 }
 0xebe   :  { %v735_v1 = vmul.f32 %v1602_v0, %v733_v63  ;;  %vm740_vm15 = vweird.f32 %v1602_v0 }
 0xebf   :  { %vm741_vm4 = vmor %vm739_vm0, %vm740_vm15  ;;  %vm1462_vm15 = vcmask 15360  }
 0xec0   :  { %v736_v3 = vsub.f32 1.0, %v735_v1 }
 0xec2   :  { %v737_v5 = vmul.f32 %v1602_v0, %v736_v3 }
 0xec4   :  { %v738_v8 = vadd.f32 %v1602_v0, %v737_v5  ;;  %v52_v5 = vld [vmem:[%s2285_s1 + $0x48] sm:$0xff] }
 0xec6   :  { %v742_v12 = vsel %vm741_vm4, %v1602_v0, %v738_v8  ;;  %v67_v8 = vadd.f32 1.0, %v52_v5 }
 0xec7   :  { %v747_v15 = vsel %vm744_vm5, %v746_v13, %v742_v12 }
 0xec8   :  { %v750_v20 = vmul.f32 %v747_v15, %v692_v51 }
 0xf25   :  { %v753_v14 = vpop.permute.xlu1 %752 }
 0xf26   :  { %v755_v17 = vmul.f32 %v753_v14, %v747_v15 }
 0xf28   :  { %757 = vrot.lane.b32.xlu2 %v755_v17, %s1695_s24 }
 0xf30   :  { %107 = vperm.xlu2 %1547, %v65_v19  }
 0xf82   :  { %v758_v21 = vpop.permute.xlu2 %757 }
 0xf83   :  { %v760_v22 = vadd.f32 %v758_v21, %v750_v20 }
 0xf85   :  { %1603 = vtanh.f32 %v760_v22 }
 0xf8a   :  { %v108_v24 = vpop.permute.xlu2 %107 }
 0xf8b   :  { %v1604_v25 = vpop.eup %1603  ;;  %v137_v26 = vmul.f32 %v108_v24, %v38_v23 }
 0xf8c   :  { %763 = vrot.lane.b32.xlu0 %v1604_v25, %s1696_s29  ;;  %v40_v25 = vld [vmem:[%s2289_s0 + $0x48] sm:$0xff] }
 0xf8d   :  { %v149_v27 = vsel %vm57_vm2, %v137_v26, %v38_v23 }
 0xf8e   :  { %162 = vst.msk [vmem:[%s2290_s8 + $0x38] sm:$0xff] %vm154_vm3, %v149_v27  ;;  %1491 = vmatmul.msk.f32.gmra.mxu0 %vm154_vm3, %v149_v27 }
 0xffe   :  { %v764_v28 = vpop.permute.xlu0 %763 }
 0xfff   :  { %v766_v29 = vmul.f32 %v764_v28, %v747_v15 }
0x1001   :  { %768 = vrot.lane.b32.xlu1 %v766_v29, %s1695_s24 }
0x100b   :  { %v246_v2 = vpop.f32.mrf.mxu0 }
0x100c   :  { %v269_v4 = vadd.f32 %v1821_v16, %v246_v2 }
0x1073   :  { %v769_v30 = vpop.permute.xlu1 %768 }
0x1074   :  { %772 = vst.msk [vmem:[#allocation3 + $0x30] sm:$0xff] %vm294_vm1, %v769_v30  ;;  %1511 = vmatmul.msk.f32.vlgmr.msra.gmra.mxu2 %vm294_vm1, %v769_v30 }
0x10f7   :  { %v794_v6 = vpop.f32.mrf.mxu2 }
0x10f8   :  { %v797_v31 = vadd.f32 %v794_v6, %v269_v4 }
0x10fa   :  { %1605 = vtanh.f32 %v797_v31  ;;  %v1512_v32 = vmul.f32 -1.442695, %v797_v31 }
0x10fc   :  { %1607 = vpow2.f32 %v1512_v32  ;;  %v1127_v32 = vld [vmem:[%s2292_s6 + $0x10] sm:$0xff] }
0x1100   :  { %v1606_v7 = vpop.eup %1605 }
0x1101   :  { %820 = vrot.lane.b32.xlu0 %v1606_v7, %s1696_s29  ;;  %v1128_v7 = vld [vmem:[%s2292_s6 + $0x18] sm:$0xff] }
0x1102   :  { %v1608_v33 = vpop.eup %1607  ;;  %1181 = vmatpush.msra.mxu1 %v1128_v7  ;;  %1534 = vmatpush.msra.mxu2 %v1128_v7 }
0x1103   :  { %v801_v34 = vadd.f32 1.0, %v1608_v33  ;;  %v1126_v33 = vld [vmem:[%s2292_s6 + $0x8] sm:$0xff] }
0x1104   :  { %1182 = vmatpush.msra.mxu1 %v1127_v32  ;;  %1536 = vmatpush.msra.mxu2 %v1127_v32 }
0x1105   :  { %1609 = vrcp.f32 %v801_v34  ;;  %v813_v42 = vand.u32 2147483648, %v801_v34  ;;  %vm807_vm7 = vweird.f32 %v801_v34  ;;  %v811_v43 = vand.u32 2147483647, %v801_v34 }
0x1106   :  { %1183 = vmatpush.msra.mxu1 %v1126_v33  ;;  %1538 = vmatpush.msra.mxu2 %v1126_v33 }
0x1107   :  { %v814_v45 = vor.u32 1.1754944e-38, %v813_v42  ;;  %vm812_vm9 = vcmp.eq.f32.partialorder %v811_v43, 8.507059e+37  ;;  %v1117_v42 = vld [vmem:[#allocation3 + $0x20] sm:$0xff] }
0x110b   :  { %v1610_v35 = vpop.eup %1609 }
0x110c   :  { %v803_v36 = vmul.f32 %v1610_v35, %v801_v34  ;;  %vm808_vm6 = vweird.f32 %v1610_v35  ;;  %v1125_v34 = vld [vmem:[%s2292_s6] sm:$0xff] }
0x110d   :  { %vm809_vm8 = vmor %vm807_vm7, %vm808_vm6  ;;  %1184 = vmatpush.msra.mxu1 %v1125_v34  ;;  %1540 = vmatpush.msra.mxu2 %v1125_v34 }
0x110e   :  { %v804_v37 = vsub.f32 1.0, %v803_v36  ;;  %v1113_v36 = vld [vmem:[#allocation3] sm:$0xff] }
0x1110   :  { %v805_v40 = vmul.f32 %v1610_v35, %v804_v37  ;;  %v1114_v37 = vld [vmem:[#allocation3 + $0x8] sm:$0xff] }
0x1112   :  { %v806_v41 = vadd.f32 %v1610_v35, %v805_v40  ;;  %v1115_v40 = vld [vmem:[#allocation3 + $0x10] sm:$0xff] }
0x1114   :  { %v810_v44 = vsel %vm809_vm8, %v1610_v35, %v806_v41  ;;  %v1116_v41 = vld [vmem:[#allocation3 + $0x18] sm:$0xff] }
0x1115   :  { %v815_v47 = vsel %vm812_vm9, %v814_v45, %v810_v44  ;;  %v2084_v44 = vld [vmem:[%s2291_s5] sm:$0xff] }
0x1116   :  { %v818_v51 = vmul.f32 %v815_v47, %v760_v22 }
0x1173   :  { %v821_v46 = vpop.permute.xlu0 %820 }
0x1174   :  { %v823_v48 = vmul.f32 %v821_v46, %v815_v47 }
0x1176   :  { %825 = vrot.lane.b32.xlu1 %v823_v48, %s1695_s24  ;;  %v2093_v48 = vld [vmem:[%s2293_s7] ss:$0 sm:$0xff] }
0x117e   :  { %112 = vperm.xlu1 %1546, %v66_v50  }
0x11e8   :  { %v826_v52 = vpop.permute.xlu1 %825 }
0x11e9   :  { %v828_v53 = vadd.f32 %v826_v52, %v818_v51 }
0x11eb   :  { %1611 = vtanh.f32 %v828_v53 }
0x11f0   :  { %v113_v55 = vpop.permute.xlu1 %112 }
0x11f1   :  { %v1612_v56 = vpop.eup %1611  ;;  %v138_v57 = vmul.f32 %v113_v55, %v39_v54 }
0x11f2   :  { %831 = vrot.lane.b32.xlu2 %v1612_v56, %s1696_s29 }
0x11f3   :  { %v150_v58 = vsel %vm57_vm2, %v138_v57, %v39_v54 }
0x11f4   :  { %163 = vst.msk [vmem:[%s2290_s8 + $0x40] sm:$0xff] %vm154_vm3, %v150_v58  ;;  %1492 = vmatmul.msk.f32.gmra.mxu0 %vm154_vm3, %v150_v58 }
0x124c   :  { %v832_v59 = vpop.permute.xlu2 %831 }
0x124d   :  { %v834_v60 = vmul.f32 %v832_v59, %v815_v47 }
0x124f   :  { %836 = vrot.lane.b32.xlu0 %v834_v60, %s1695_s24 }
0x1271   :  { %v249_v62 = vpop.f32.mrf.mxu0 }
0x1272   :  { %v270_v63 = vadd.f32 %v1821_v16, %v249_v62 }
0x12c1   :  { %v837_v61 = vpop.permute.xlu0 %836 }
0x12c2   :  { %840 = vst.msk [vmem:[#allocation3 + $0x38] sm:$0xff] %vm294_vm1, %v837_v61  ;;  %1513 = vmatmul.msk.f32.vlgmr.msrb.gmra.mxu3 %vm294_vm1, %v837_v61 }
0x12c3   :  { %1535 = vmatpush.msrb.mxu3 %v1128_v7 }
0x12c5   :  { %1537 = vmatpush.msrb.mxu3 %v1127_v32 }
0x12c7   :  { %1539 = vmatpush.msrb.mxu3 %v1126_v33 }
0x12c9   :  { %1541 = vmatpush.msrb.mxu3 %v1125_v34 }
0x1345   :  { %v862_v0 = vpop.f32.mrf.mxu3 }
0x1346   :  { %v865_v1 = vadd.f32 %v862_v0, %v270_v63 }
0x1348   :  { %1613 = vtanh.f32 %v865_v1  ;;  %v1514_v9 = vmul.f32 -1.442695, %v865_v1 }
0x134a   :  { %1615 = vpow2.f32 %v1514_v9 }
0x134e   :  { %v1614_v3 = vpop.eup %1613 }
0x134f   :  { %888 = vrot.lane.b32.xlu2 %v1614_v3, %s1696_s29 }
0x1350   :  { %v1616_v10 = vpop.eup %1615 }
0x1351   :  { %v869_v12 = vadd.f32 1.0, %v1616_v10 }
0x1353   :  { %1617 = vrcp.f32 %v869_v12  ;;  %v881_v18 = vand.u32 2147483648, %v869_v12  ;;  %vm875_vm11 = vweird.f32 %v869_v12  ;;  %v879_v19 = vand.u32 2147483647, %v869_v12 }
0x1355   :  { %v882_v21 = vor.u32 1.1754944e-38, %v881_v18  ;;  %vm880_vm13 = vcmp.eq.f32.partialorder %v879_v19, 8.507059e+37 }
0x1357   :  { %117 = vperm.xlu2 %1547, %v67_v8  }
0x1359   :  { %v1618_v13 = vpop.eup %1617 }
0x135a   :  { %v871_v14 = vmul.f32 %v1618_v13, %v869_v12  ;;  %vm876_vm10 = vweird.f32 %v1618_v13 }
0x135b   :  { %vm877_vm12 = vmor %vm875_vm11, %vm876_vm10 }
0x135c   :  { %v872_v16 = vsub.f32 1.0, %v871_v14 }
0x135e   :  { %v873_v15 = vmul.f32 %v1618_v13, %v872_v16 }
0x1360   :  { %v874_v17 = vadd.f32 %v1618_v13, %v873_v15 }
0x1362   :  { %v878_v20 = vsel %vm877_vm12, %v1618_v13, %v874_v17 }
0x1363   :  { %v883_v23 = vsel %vm880_vm13, %v882_v21, %v878_v20 }
0x1364   :  { %v886_v29 = vmul.f32 %v883_v23, %v828_v53 }
0x13a9   :  { %v889_v22 = vpop.permute.xlu2 %888 }
0x13aa   :  { %v891_v24 = vmul.f32 %v889_v22, %v883_v23 }
0x13ac   :  { %893 = vrot.lane.b32.xlu0 %v891_v24, %s1695_s24 }
0x13b1   :  { %v118_v26 = vpop.permute.xlu2 %117 }
0x13b2   :  { %v139_v27 = vmul.f32 %v118_v26, %v40_v25 }
0x13b4   :  { %v151_v28 = vsel %vm57_vm2, %v139_v27, %v40_v25 }
0x13b5   :  { %164 = vst.msk [vmem:[%s2290_s8 + $0x48] sm:$0xff] %vm154_vm3, %v151_v28  ;;  %1493 = vmatmul.msk.f32.gmra.mxu0 %vm154_vm3, %v151_v28 }
0x141e   :  { %v894_v30 = vpop.permute.xlu0 %893 }
0x141f   :  { %v2057_v2 = vadd.f32 %v894_v30, %v886_v29 }
0x1421   :  { %1619 = vtanh.f32 %v2057_v2 }
0x1427   :  { %v1620_v4 = vpop.eup %1619 }
0x1428   :  { %899 = vrot.lane.b32.xlu1 %v1620_v4, %s1696_s29 }
0x1432   :  { %v252_v43 = vpop.f32.mrf.mxu0 }
0x1433   :  { %v271_v45 = vadd.f32 %v2084_v44, %v252_v43 }
0x149a   :  { %v900_v6 = vpop.permute.xlu1 %899 }
0x149b   :  { %v902_v31 = vmul.f32 %v900_v6, %v883_v23 }
0x149d   :  { %904 = vrot.lane.b32.xlu0 %v902_v31, %s1695_s24 }
0x150f   :  { %v905_v35 = vpop.permute.xlu0 %904 }
0x1510   :  { %908 = vst.msk [vmem:[#allocation3 + $0x40] sm:$0xff] %vm294_vm1, %v905_v35  ;;  %1515 = vmatmul.msk.f32.vlgmr.msrb.gmra.mxu1 %vm294_vm1, %v905_v35 }
0x1518   :  { %1521 = vmatmul.msk.f32.vlgmr.msra.gmra.mxu1 %vm294_vm1, %v1113_v36 }
0x1520   :  { %1522 = vmatmul.msk.f32.gmra.mxu1 %vm294_vm1, %v1114_v37 }
0x1528   :  { %1523 = vmatmul.msk.f32.gmra.mxu1 %vm294_vm1, %v1115_v40 }
0x1530   :  { %1524 = vmatmul.msk.f32.gmra.mxu1 %vm294_vm1, %v1116_v41 }
0x1538   :  { %1525 = vmatmul.msk.f32.gmra.mxu1 %vm294_vm1, %v1117_v42 }
0x158d   :  { %v930_v46 = vpop.f32.mrf.mxu1 }
0x158e   :  { %v2087_v47 = vadd.f32 %v930_v46, %v271_v45 }
0x1590   :  { %1621 = vtanh.f32 %v2087_v47 }
0x1595   :  { %v1186_v49 = vpop.f32.mrf.mxu1 }
0x1596   :  { %v1622_v50 = vpop.eup %1621  ;;  %v1187_v51 = vadd.f32 %v2093_v48, %v1186_v49 }
0x1597   :  { %956 = vrot.lane.b32.xlu1 %v1622_v50, %s1696_s29 }
0x1598   :  { %v1258_v52 = vand.u32 2147483647, %v1187_v51  ;;  %v1222_v19 = vmax.f32 %v1187_v51, 0.0  ;;  %vm1234_vm14 = vcmp.ne.f32.partialorder %v1187_v51, %v1187_v51 }
0x159a   :  { %v1270_v53 = vsub.f32 0.0, %v1258_v52 }
0x159c   :  { %v1282_v54 = vmul.f32 1.442695, %v1270_v53 }
0x159d   :  { %v1189_v55 = vpop.f32.mrf.mxu1 }
0x159e   :  { %1623 = vpow2.f32 %v1282_v54  ;;  %v2098_v56 = vadd.f32 %v2093_v48, %v1189_v55 }
0x15a0   :  { %v1259_v57 = vand.u32 2147483647, %v2098_v56  ;;  %v1223_v35 = vmax.f32 %v2098_v56, 0.0  ;;  %vm1235_vm4 = vcmp.ne.f32.partialorder %v2098_v56, %v2098_v56 }
0x15a2   :  { %v1271_v58 = vsub.f32 0.0, %v1259_v57 }
0x15a4   :  { %v1624_v59 = vpop.eup %1623  ;;  %v1284_v60 = vmul.f32 1.442695, %v1271_v58 }
0x15a5   :  { %v1306_v61 = vadd.f32 1.0, %v1624_v59  ;;  %v1192_v62 = vpop.f32.mrf.mxu1  ;;  %v1309_v63 = vmul.f32 -0.5, %v1624_v59  ;;  %v1312_v8 = vand.u32 2147483647, %v1624_v59 }
0x15a6   :  { %1625 = vpow2.f32 %v1284_v60  ;;  %v2102_v0 = vadd.f32 %v2093_v48, %v1192_v62 }
0x15a7   :  { %1627 = vlog2.f32 %v1306_v61  ;;  %v1310_v3 = vadd.f32 1.0, %v1309_v63  ;;  %vm1313_vm3 = vcmp.lt.f32.partialorder %v1312_v8, 0.0004427343 }
0x15a8   :  { %v1260_v1 = vand.u32 2147483647, %v2102_v0  ;;  %v1224_v58 = vmax.f32 %v2102_v0, 0.0  ;;  %vm1236_vm6 = vcmp.ne.f32.partialorder %v2102_v0, %v2102_v0 }
0x15a9   :  { %v1311_v17 = vmul.f32 %v1624_v59, %v1310_v3 }
0x15aa   :  { %v1272_v5 = vsub.f32 0.0, %v1260_v1 }
0x15ac   :  { %v1626_v9 = vpop.eup %1625  ;;  %v1286_v10 = vmul.f32 1.442695, %v1272_v5 }
0x15ad   :  { %v1628_v12 = vpop.eup %1627  ;;  %v1315_v13 = vadd.f32 1.0, %v1626_v9  ;;  %v1318_v14 = vmul.f32 -0.5, %v1626_v9  ;;  %v1195_v16 = vpop.f32.mrf.mxu1  ;;  %v1321_v26 = vand.u32 2147483647, %v1626_v9 }
0x15ae   :  { %v1308_v15 = vmul.f32 0.6931472, %v1628_v12  ;;  %1629 = vpow2.f32 %v1286_v10  ;;  %v2106_v18 = vadd.f32 %v2093_v48, %v1195_v16 }
0x15af   :  { %1631 = vlog2.f32 %v1315_v13  ;;  %v1319_v23 = vadd.f32 1.0, %v1318_v14  ;;  %vm1322_vm0 = vcmp.lt.f32.partialorder %v1321_v26, 0.0004427343 }
0x15b0   :  { %v1314_v20 = vsel %vm1313_vm3, %v1311_v17, %v1308_v15  ;;  %v1261_v21 = vand.u32 2147483647, %v2106_v18  ;;  %v1225_v13 = vmax.f32 %v2106_v18, 0.0  ;;  %vm1237_vm8 = vcmp.ne.f32.partialorder %v2106_v18, %v2106_v18 }
0x15b1   :  { %v1414_v22 = vadd.f32 %v1314_v20, %v1222_v19  ;;  %v1320_v4 = vmul.f32 %v1626_v9, %v1319_v23 }
0x15b2   :  { %v1273_v24 = vsub.f32 0.0, %v1261_v21 }
0x15b3   :  { %v1426_v25 = vsel %vm1234_vm14, %v1187_v51, %v1414_v22 }
0x15b4   :  { %v1630_v27 = vpop.eup %1629  ;;  %v1438_v28 = vadd.f32 1e-06, %v1426_v25  ;;  %v1288_v29 = vmul.f32 1.442695, %v1273_v24 }
0x15b5   :  { %v1632_v30 = vpop.eup %1631  ;;  %v1324_v6 = vadd.f32 1.0, %v1630_v27  ;;  %v1327_v31 = vmul.f32 -0.5, %v1630_v27  ;;  %v1198_v7 = vpop.f32.mrf.mxu1  ;;  %v1330_v45 = vand.u32 2147483647, %v1630_v27 }
0x15b6   :  { %v1450_v32 = vsel %vm57_vm2, %v1187_v51, %v1438_v28  ;;  %v1317_v33 = vmul.f32 0.6931472, %v1632_v30  ;;  %1633 = vpow2.f32 %v1288_v29  ;;  %v2112_v34 = vadd.f32 %v2093_v48, %v1198_v7 }
0x15b7   :  { %1463 = vst.msk [vmem:[%s2294_s9] sm:$0xff] %vm1462_vm15, %v1450_v32  ;;  %1635 = vlog2.f32 %v1324_v6  ;;  %v1328_v41 = vadd.f32 1.0, %v1327_v31  ;;  %vm1331_vm5 = vcmp.lt.f32.partialorder %v1330_v45, 0.0004427343  ;;  %v1516_v29 = vmul.f32 -1.442695, %v2087_v47 }
0x15b8   :  { %v1323_v36 = vsel %vm1322_vm0, %v1320_v4, %v1317_v33  ;;  %v1262_v37 = vand.u32 2147483647, %v2112_v34  ;;  %v1226_v24 = vmax.f32 %v2112_v34, 0.0  ;;  %vm1238_vm10 = vcmp.ne.f32.partialorder %v2112_v34, %v2112_v34 }
0x15b9   :  { %v1415_v40 = vadd.f32 %v1323_v36, %v1223_v35  ;;  %v1329_v52 = vmul.f32 %v1630_v27, %v1328_v41 }
0x15ba   :  { %v1274_v42 = vsub.f32 0.0, %v1262_v37 }
0x15bb   :  { %v1427_v43 = vsel %vm1235_vm4, %v2098_v56, %v1415_v40 }
0x15bc   :  { %v1634_v46 = vpop.eup %1633  ;;  %v1439_v49 = vadd.f32 1e-06, %v1427_v43  ;;  %v1290_v50 = vmul.f32 1.442695, %v1274_v42 }
0x15bd   :  { %v1636_v51 = vpop.eup %1635  ;;  %v1333_v53 = vadd.f32 1.0, %v1634_v46  ;;  %v1336_v57 = vmul.f32 -0.5, %v1634_v46  ;;  %v1339_v62 = vand.u32 2147483647, %v1634_v46 }
0x15be   :  { %v1451_v54 = vsel %vm57_vm2, %v2098_v56, %v1439_v49  ;;  %v1326_v55 = vmul.f32 0.6931472, %v1636_v51  ;;  %1637 = vpow2.f32 %v1290_v50 }
0x15bf   :  { %1464 = vst.msk [vmem:[%s2294_s9 + $0x8] sm:$0xff] %vm1462_vm15, %v1451_v54  ;;  %1639 = vlog2.f32 %v1333_v53  ;;  %v1337_v61 = vadd.f32 1.0, %v1336_v57  ;;  %vm1340_vm7 = vcmp.lt.f32.partialorder %v1339_v62, 0.0004427343  ;;  %v1120_v53 = vld [vmem:[#allocation3 + $0x38] sm:$0xff]  ;;  %v1121_v54 = vld [vmem:[#allocation3 + $0x40] sm:$0xff]  ;;  %v272_v57 = vadd.f32 %v2084_v44, %v1904_v38 }
0x15c0   :  { %v1332_v59 = vsel %vm1331_vm5, %v1329_v52, %v1326_v55  ;;  %v1118_v52 = vld [vmem:[#allocation3 + $0x28] sm:$0xff] }
0x15c1   :  { %v1416_v60 = vadd.f32 %v1332_v59, %v1224_v58  ;;  %v1338_v10 = vmul.f32 %v1634_v46, %v1337_v61 }
0x15c3   :  { %v1428_v56 = vsel %vm1236_vm6, %v2102_v0, %v1416_v60 }
0x15c4   :  { %v1638_v63 = vpop.eup %1637  ;;  %v1440_v1 = vadd.f32 1e-06, %v1428_v56 }
0x15c5   :  { %v1640_v3 = vpop.eup %1639  ;;  %v1342_v5 = vadd.f32 1.0, %v1638_v63  ;;  %v1345_v12 = vmul.f32 -0.5, %v1638_v63  ;;  %v1348_v17 = vand.u32 2147483647, %v1638_v63 }
0x15c6   :  { %v1452_v8 = vsel %vm57_vm2, %v2102_v0, %v1440_v1  ;;  %v1335_v9 = vmul.f32 0.6931472, %v1640_v3 }
0x15c7   :  { %1465 = vst.msk [vmem:[%s2294_s9 + $0x10] sm:$0xff] %vm1462_vm15, %v1452_v8  ;;  %1641 = vlog2.f32 %v1342_v5  ;;  %v1346_v15 = vadd.f32 1.0, %v1345_v12  ;;  %vm1349_vm9 = vcmp.lt.f32.partialorder %v1348_v17, 0.0004427343 }
0x15c8   :  { %v1341_v14 = vsel %vm1340_vm7, %v1338_v10, %v1335_v9  ;;  %1643 = vpow2.f32 %v1516_v29 }
0x15c9   :  { %v1417_v16 = vadd.f32 %v1341_v14, %v1225_v13  ;;  %v1347_v23 = vmul.f32 %v1638_v63, %v1346_v15 }
0x15cb   :  { %v1429_v0 = vsel %vm1237_vm8, %v2106_v18, %v1417_v16 }
0x15cc   :  { %v1441_v19 = vadd.f32 1e-06, %v1429_v0 }
0x15cd   :  { %v1642_v20 = vpop.eup %1641 }
0x15ce   :  { %v1453_v21 = vsel %vm57_vm2, %v2106_v18, %v1441_v19  ;;  %v1344_v22 = vmul.f32 0.6931472, %v1642_v20  ;;  %v1644_v30 = vpop.eup %1643 }
0x15cf   :  { %1466 = vst.msk [vmem:[%s2294_s9 + $0x18] sm:$0xff] %vm1462_vm15, %v1453_v21  ;;  %v937_v4 = vadd.f32 1.0, %v1644_v30 }
0x15d0   :  { %v1350_v25 = vsel %vm1349_vm9, %v1347_v23, %v1344_v22 }
0x15d1   :  { %v1418_v26 = vadd.f32 %v1350_v25, %v1226_v24  ;;  %1645 = vrcp.f32 %v937_v4  ;;  %v949_v35 = vand.u32 2147483648, %v937_v4  ;;  %vm943_vm12 = vweird.f32 %v937_v4 }
0x15d3   :  { %v1430_v27 = vsel %vm1238_vm10, %v2112_v34, %v1418_v26  ;;  %v950_v37 = vor.u32 1.1754944e-38, %v949_v35 }
0x15d4   :  { %v1442_v28 = vadd.f32 1e-06, %v1430_v27 }
0x15d6   :  { %v1454_v18 = vsel %vm57_vm2, %v2112_v34, %v1442_v28  ;;  %v947_v34 = vand.u32 2147483647, %v937_v4 }
0x15d7   :  { %1467 = vst.msk [vmem:[%s2294_s9 + $0x20] sm:$0xff] %vm1462_vm15, %v1454_v18  ;;  %v1646_v6 = vpop.eup %1645 }
0x15d8   :  { %v939_v31 = vmul.f32 %v1646_v6, %v937_v4  ;;  %vm944_vm11 = vweird.f32 %v1646_v6  ;;  %vm948_vm3 = vcmp.eq.f32.partialorder %v947_v34, 8.507059e+37 }
0x15d9   :  { %vm945_vm13 = vmor %vm943_vm12, %vm944_vm11 }
0x15da   :  { %v940_v7 = vsub.f32 1.0, %v939_v31 }
0x15dc   :  { %v941_v32 = vmul.f32 %v1646_v6, %v940_v7 }
0x15de   :  { %v942_v33 = vadd.f32 %v1646_v6, %v941_v32 }
0x15e0   :  { %v946_v36 = vsel %vm945_vm13, %v1646_v6, %v942_v33 }
0x15e1   :  { %v951_v41 = vsel %vm948_vm3, %v950_v37, %v946_v36 }
0x15e2   :  { %v954_v42 = vmul.f32 %v951_v41, %v2057_v2  ;;  %v1119_v2 = vld [vmem:[#allocation3 + $0x30] sm:$0xff] }
0x1609   :  { %v957_v40 = vpop.permute.xlu1 %956 }
0x160a   :  { %v959_v47 = vmul.f32 %v957_v40, %v951_v41 }
0x160c   :  { %961 = vrot.lane.b32.xlu2 %v959_v47, %s1695_s24 }
0x1666   :  { %v962_v43 = vpop.permute.xlu2 %961 }
0x1667   :  { %v2166_v45 = vadd.f32 %v962_v43, %v954_v42 }
0x1669   :  { %1647 = vtanh.f32 %v2166_v45 }
0x166f   :  { %v1648_v46 = vpop.eup %1647 }
0x1670   :  { %967 = vrot.lane.b32.xlu0 %v1648_v46, %s1696_s29 }
0x16e2   :  { %v968_v49 = vpop.permute.xlu0 %967 }
0x16e3   :  { %v970_v50 = vmul.f32 %v968_v49, %v951_v41 }
0x16e5   :  { %972 = vrot.lane.b32.xlu1 %v970_v50, %s1695_s24 }
0x1757   :  { %v973_v51 = vpop.permute.xlu1 %972 }
0x1758   :  { %976 = vst.msk [vmem:[#allocation3 + $0x48] sm:$0xff] %vm294_vm1, %v973_v51  ;;  %1517 = vmatmul.msk.f32.vlgmr.msrb.gmra.mxu2 %vm294_vm1, %v973_v51 }
0x175f   :  { %v1122_v55 = vld [vmem:[#allocation3 + $0x48] sm:$0xff] }
0x1760   :  { %1526 = vmatmul.msk.f32.vlgmr.msra.gmra.mxu2 %vm294_vm1, %v1118_v52 }
0x1768   :  { %1527 = vmatmul.msk.f32.gmra.mxu2 %vm294_vm1, %v1119_v2 }
0x1770   :  { %1528 = vmatmul.msk.f32.gmra.mxu2 %vm294_vm1, %v1120_v53 }
0x1778   :  { %1529 = vmatmul.msk.f32.gmra.mxu2 %vm294_vm1, %v1121_v54 }
0x1780   :  { %1530 = vmatmul.msk.f32.gmra.mxu2 %vm294_vm1, %v1122_v55 }
0x17db   :  { %v998_v58 = vpop.f32.mrf.mxu2 }
0x17dc   :  { %v2180_v59 = vadd.f32 %v998_v58, %v272_v57 }
0x17de   :  { %1649 = vtanh.f32 %v2180_v59 }
0x17e3   :  { %v1201_v60 = vpop.f32.mrf.mxu2 }
0x17e4   :  { %v1650_v61 = vpop.eup %1649  ;;  %v1202_v56 = vadd.f32 %v2093_v48, %v1201_v60 }
0x17e5   :  { %1024 = vrot.lane.b32.xlu2 %v1650_v61, %s1696_s29 }
0x17e6   :  { %v1263_v62 = vand.u32 2147483647, %v1202_v56  ;;  %v1227_v18 = vmax.f32 %v1202_v56, 0.0  ;;  %vm1239_vm0 = vcmp.ne.f32.partialorder %v1202_v56, %v1202_v56 }
0x17e8   :  { %v1275_v63 = vsub.f32 0.0, %v1263_v62 }
0x17ea   :  { %v1292_v1 = vmul.f32 1.442695, %v1275_v63 }
0x17eb   :  { %v1204_v3 = vpop.f32.mrf.mxu2 }
0x17ec   :  { %1651 = vpow2.f32 %v1292_v1  ;;  %v2186_v5 = vadd.f32 %v2093_v48, %v1204_v3 }
0x17ee   :  { %v1264_v38 = vand.u32 2147483647, %v2186_v5  ;;  %v1228_v49 = vmax.f32 %v2186_v5, 0.0  ;;  %vm1240_vm5 = vcmp.ne.f32.partialorder %v2186_v5, %v2186_v5 }
0x17f0   :  { %v1276_v8 = vsub.f32 0.0, %v1264_v38 }
0x17f2   :  { %v1652_v9 = vpop.eup %1651  ;;  %v1294_v10 = vmul.f32 1.442695, %v1276_v8 }
0x17f3   :  { %v1351_v12 = vadd.f32 1.0, %v1652_v9  ;;  %v1207_v13 = vpop.f32.mrf.mxu2  ;;  %v1354_v14 = vmul.f32 -0.5, %v1652_v9  ;;  %v1357_v19 = vand.u32 2147483647, %v1652_v9 }
0x17f4   :  { %1653 = vpow2.f32 %v1294_v10  ;;  %v2190_v16 = vadd.f32 %v2093_v48, %v1207_v13 }
0x17f5   :  { %1655 = vlog2.f32 %v1351_v12  ;;  %v1355_v0 = vadd.f32 1.0, %v1354_v14  ;;  %vm1358_vm14 = vcmp.lt.f32.partialorder %v1357_v19, 0.0004427343  ;;  %v1518_v14 = vmul.f32 -1.442695, %v2180_v59 }
0x17f6   :  { %v1265_v15 = vand.u32 2147483647, %v2190_v16  ;;  %v1229_v38 = vmax.f32 %v2190_v16, 0.0  ;;  %vm1241_vm7 = vcmp.ne.f32.partialorder %v2190_v16, %v2190_v16 }
0x17f7   :  { %v1356_v27 = vmul.f32 %v1652_v9, %v1355_v0 }
0x17f8   :  { %v1277_v17 = vsub.f32 0.0, %v1265_v15 }
0x17fa   :  { %v1654_v20 = vpop.eup %1653  ;;  %v1296_v21 = vmul.f32 1.442695, %v1277_v17 }
0x17fb   :  { %v1656_v22 = vpop.eup %1655  ;;  %v1360_v23 = vadd.f32 1.0, %v1654_v20  ;;  %v1363_v24 = vmul.f32 -0.5, %v1654_v20  ;;  %v1210_v25 = vpop.f32.mrf.mxu2  ;;  %v1366_v32 = vand.u32 2147483647, %v1654_v20 }
0x17fc   :  { %v1353_v26 = vmul.f32 0.6931472, %v1656_v22  ;;  %1657 = vpow2.f32 %v1296_v21  ;;  %v2194_v28 = vadd.f32 %v2093_v48, %v1210_v25 }
0x17fd   :  { %1659 = vlog2.f32 %v1360_v23  ;;  %v1364_v6 = vadd.f32 1.0, %v1363_v24  ;;  %vm1367_vm4 = vcmp.lt.f32.partialorder %v1366_v32, 0.0004427343 }
0x17fe   :  { %v1359_v29 = vsel %vm1358_vm14, %v1356_v27, %v1353_v26  ;;  %v1266_v30 = vand.u32 2147483647, %v2194_v28  ;;  %v1230_v23 = vmax.f32 %v2194_v28, 0.0  ;;  %vm1242_vm9 = vcmp.ne.f32.partialorder %v2194_v28, %v2194_v28 }
0x17ff   :  { %v1419_v4 = vadd.f32 %v1359_v29, %v1227_v18  ;;  %v1365_v37 = vmul.f32 %v1654_v20, %v1364_v6 }
0x1800   :  { %v1278_v31 = vsub.f32 0.0, %v1266_v30 }
0x1801   :  { %v1431_v7 = vsel %vm1239_vm0, %v1202_v56, %v1419_v4 }
0x1802   :  { %v1658_v33 = vpop.eup %1657  ;;  %v1443_v35 = vadd.f32 1e-06, %v1431_v7  ;;  %v1298_v34 = vmul.f32 1.442695, %v1278_v31 }
0x1803   :  { %v1660_v36 = vpop.eup %1659  ;;  %v1369_v40 = vadd.f32 1.0, %v1658_v33  ;;  %v1372_v41 = vmul.f32 -0.5, %v1658_v33  ;;  %v1213_v47 = vpop.f32.mrf.mxu2  ;;  %v1375_v55 = vand.u32 2147483647, %v1658_v33 }
0x1804   :  { %v1455_v42 = vsel %vm57_vm2, %v1202_v56, %v1443_v35  ;;  %v1362_v43 = vmul.f32 0.6931472, %v1660_v36  ;;  %1661 = vpow2.f32 %v1298_v34  ;;  %v2200_v46 = vadd.f32 %v2093_v48, %v1213_v47 }
0x1805   :  { %1468 = vst.msk [vmem:[%s2294_s9 + $0x28] sm:$0xff] %vm1462_vm15, %v1455_v42  ;;  %1663 = vlog2.f32 %v1369_v40  ;;  %v1373_v2 = vadd.f32 1.0, %v1372_v41  ;;  %vm1376_vm6 = vcmp.lt.f32.partialorder %v1375_v55, 0.0004427343 }
0x1806   :  { %v1368_v50 = vsel %vm1367_vm4, %v1365_v37, %v1362_v43  ;;  %v1267_v51 = vand.u32 2147483647, %v2200_v46  ;;  %v1231_v31 = vmax.f32 %v2200_v46, 0.0  ;;  %vm1243_vm11 = vcmp.ne.f32.partialorder %v2200_v46, %v2200_v46 }
0x1807   :  { %v1420_v52 = vadd.f32 %v1368_v50, %v1228_v49  ;;  %v1374_v56 = vmul.f32 %v1658_v33, %v1373_v2 }
0x1808   :  { %v1279_v53 = vsub.f32 0.0, %v1267_v51 }
0x1809   :  { %v1432_v54 = vsel %vm1240_vm5, %v2186_v5, %v1420_v52 }
0x180a   :  { %v1662_v57 = vpop.eup %1661  ;;  %v1444_v58 = vadd.f32 1e-06, %v1432_v54  ;;  %v1300_v60 = vmul.f32 1.442695, %v1279_v53 }
0x180b   :  { %v1664_v61 = vpop.eup %1663  ;;  %v1378_v62 = vadd.f32 1.0, %v1662_v57  ;;  %v1381_v3 = vmul.f32 -0.5, %v1662_v57  ;;  %v1384_v12 = vand.u32 2147483647, %v1662_v57 }
0x180c   :  { %v1456_v63 = vsel %vm57_vm2, %v2186_v5, %v1444_v58  ;;  %v1371_v1 = vmul.f32 0.6931472, %v1664_v61  ;;  %1665 = vpow2.f32 %v1300_v60 }
0x180d   :  { %1469 = vst.msk [vmem:[%s2294_s9 + $0x30] sm:$0xff] %vm1462_vm15, %v1456_v63  ;;  %1667 = vlog2.f32 %v1378_v62  ;;  %v1382_v10 = vadd.f32 1.0, %v1381_v3  ;;  %vm1385_vm8 = vcmp.lt.f32.partialorder %v1384_v12, 0.0004427343 }
0x180e   :  { %v1377_v8 = vsel %vm1376_vm6, %v1374_v56, %v1371_v1 }
0x180f   :  { %v1421_v9 = vadd.f32 %v1377_v8, %v1229_v38  ;;  %v1383_v21 = vmul.f32 %v1662_v57, %v1382_v10 }
0x1811   :  { %v1433_v5 = vsel %vm1241_vm7, %v2190_v16, %v1421_v9 }
0x1812   :  { %v1666_v13 = vpop.eup %1665  ;;  %v1445_v15 = vadd.f32 1e-06, %v1433_v5 }
0x1813   :  { %v1668_v0 = vpop.eup %1667  ;;  %v1387_v17 = vadd.f32 1.0, %v1666_v13  ;;  %v1390_v22 = vmul.f32 -0.5, %v1666_v13  ;;  %v1393_v26 = vand.u32 2147483647, %v1666_v13 }
0x1814   :  { %v1457_v19 = vsel %vm57_vm2, %v2190_v16, %v1445_v15  ;;  %v1380_v20 = vmul.f32 0.6931472, %v1668_v0 }
0x1815   :  { %1470 = vst.msk [vmem:[%s2294_s9 + $0x38] sm:$0xff] %vm1462_vm15, %v1457_v19  ;;  %1669 = vlog2.f32 %v1387_v17  ;;  %v1391_v25 = vadd.f32 1.0, %v1390_v22  ;;  %vm1394_vm10 = vcmp.lt.f32.partialorder %v1393_v26, 0.0004427343 }
0x1816   :  { %1671 = vpow2.f32 %v1518_v14  ;;  %v1386_v59 = vsel %vm1385_vm8, %v1383_v21, %v1380_v20 }
0x1817   :  { %v1422_v24 = vadd.f32 %v1386_v59, %v1230_v23  ;;  %v1392_v6 = vmul.f32 %v1666_v13, %v1391_v25 }
0x1819   :  { %v1434_v16 = vsel %vm1242_vm9, %v2194_v28, %v1422_v24 }
0x181a   :  { %v1446_v27 = vadd.f32 1e-06, %v1434_v16 }
0x181b   :  { %v1670_v18 = vpop.eup %1669 }
0x181c   :  { %v1672_v29 = vpop.eup %1671  ;;  %v1458_v30 = vsel %vm57_vm2, %v2194_v28, %v1446_v27  ;;  %v1389_v4 = vmul.f32 0.6931472, %v1670_v18 }
0x181d   :  { %1471 = vst.msk [vmem:[%s2294_s9 + $0x40] sm:$0xff] %vm1462_vm15, %v1458_v30  ;;  %v1005_v32 = vadd.f32 1.0, %v1672_v29 }
0x181e   :  { %v1395_v7 = vsel %vm1394_vm10, %v1392_v6, %v1389_v4 }
0x181f   :  { %v1423_v33 = vadd.f32 %v1395_v7, %v1231_v31  ;;  %1673 = vrcp.f32 %v1005_v32  ;;  %v1017_v42 = vand.u32 2147483648, %v1005_v32  ;;  %vm1011_vm13 = vweird.f32 %v1005_v32 }
0x1820   :  { %v1015_v43 = vand.u32 2147483647, %v1005_v32 }
0x1821   :  { %v1435_v35 = vsel %vm1243_vm11, %v2200_v46, %v1423_v33  ;;  %v1018_v50 = vor.u32 1.1754944e-38, %v1017_v42 }
0x1822   :  { %v1447_v34 = vadd.f32 1e-06, %v1435_v35  ;;  %vm1016_vm14 = vcmp.eq.f32.partialorder %v1015_v43, 8.507059e+37 }
0x1824   :  { %v1459_v28 = vsel %vm57_vm2, %v2200_v46, %v1447_v34 }
0x1825   :  { %1472 = vst.msk [vmem:[%s2294_s9 + $0x48] sm:$0xff] %vm1462_vm15, %v1459_v28  ;;  %v1674_v36 = vpop.eup %1673 }
0x1826   :  { %v1007_v37 = vmul.f32 %v1674_v36, %v1005_v32  ;;  %vm1012_vm12 = vweird.f32 %v1674_v36 }
0x1827   :  { %vm1013_vm3 = vmor %vm1011_vm13, %vm1012_vm12 }
0x1828   :  { %v1008_v40 = vsub.f32 1.0, %v1007_v37 }
0x182a   :  { %v1009_v41 = vmul.f32 %v1674_v36, %v1008_v40 }
0x182c   :  { %v1010_v47 = vadd.f32 %v1674_v36, %v1009_v41 }
0x182e   :  { %v1014_v49 = vsel %vm1013_vm3, %v1674_v36, %v1010_v47 }
0x182f   :  { %v1019_v46 = vsel %vm1016_vm14, %v1018_v50, %v1014_v49 }
0x1830   :  { %v1022_v2 = vmul.f32 %v1019_v46, %v2166_v45  ;;  %v273_v45 = vadd.f32 %v2084_v44, %v1906_v39 }
0x183f   :  { %v1025_v51 = vpop.permute.xlu2 %1024 }
0x1840   :  { %v1027_v52 = vmul.f32 %v1025_v51, %v1019_v46 }
0x1842   :  { %1029 = vrot.lane.b32.xlu0 %v1027_v52, %s1695_s24 }
0x18b4   :  { %v1030_v53 = vpop.permute.xlu0 %1029 }
0x18b5   :  { %v2254_v54 = vadd.f32 %v1030_v53, %v1022_v2 }
0x18b7   :  { %1675 = vtanh.f32 %v2254_v54 }
0x18bd   :  { %v1676_v55 = vpop.eup %1675 }
0x18be   :  { %1035 = vrot.lane.b32.xlu1 %v1676_v55, %s1696_s29 }
0x1930   :  { %v1036_v57 = vpop.permute.xlu1 %1035 }
0x1931   :  { %v1038_v58 = vmul.f32 %v1036_v57, %v1019_v46 }
0x1933   :  { %1040 = vrot.lane.b32.xlu2 %v1038_v58, %s1695_s24 }
0x198d   :  { %v1041_v60 = vpop.permute.xlu2 %1040 }
0x198e   :  { %1044 = vst.msk [vmem:[#allocation3 + $0x50] sm:$0xff] %vm294_vm1, %v1041_v60  ;;  %1519 = vmatmul.msk.f32.vlgmr.msra.gmra.mxu3 %vm294_vm1, %v1041_v60 }
0x1995   :  { %v1123_v61 = vld [vmem:[#allocation3 + $0x50] sm:$0xff] }
0x1996   :  { %1531 = vmatmul.msk.f32.vlgmr.msrb.gmra.mxu3 %vm294_vm1, %v1123_v61 }
0x1a11   :  { %v1066_v56 = vpop.f32.mrf.mxu3 }
0x1a12   :  { %v1069_v62 = vadd.f32 %v1066_v56, %v273_v45 }
0x1a14   :  { %1677 = vtanh.f32 %v1069_v62  ;;  %v1520_v23 = vmul.f32 -1.442695, %v1069_v62 }
0x1a19   :  { %v1216_v63 = vpop.f32.mrf.mxu3 }
0x1a1a   :  { %v1678_v1 = vpop.eup %1677  ;;  %v1217_v3 = vadd.f32 %v2093_v48, %v1216_v63 }
0x1a1b   :  { %1092 = vrot.lane.b32.xlu0 %v1678_v1, %s1696_s29 }
0x1a1c   :  { %v1268_v38 = vand.u32 2147483647, %v1217_v3  ;;  %v1232_v0 = vmax.f32 %v1217_v3, 0.0  ;;  %vm1244_vm4 = vcmp.ne.f32.partialorder %v1217_v3, %v1217_v3 }
0x1a1e   :  { %v1280_v8 = vsub.f32 0.0, %v1268_v38 }
0x1a20   :  { %v1302_v9 = vmul.f32 1.442695, %v1280_v8 }
0x1a22   :  { %1679 = vpow2.f32 %v1302_v9 }
0x1a28   :  { %v1680_v10 = vpop.eup %1679 }
0x1a29   :  { %v1396_v5 = vadd.f32 1.0, %v1680_v10  ;;  %v1399_v12 = vmul.f32 -0.5, %v1680_v10  ;;  %v1402_v14 = vand.u32 2147483647, %v1680_v10 }
0x1a2b   :  { %1681 = vlog2.f32 %v1396_v5  ;;  %v1400_v13 = vadd.f32 1.0, %v1399_v12  ;;  %vm1403_vm0 = vcmp.lt.f32.partialorder %v1402_v14, 0.0004427343 }
0x1a2c   :  { %1683 = vpow2.f32 %v1520_v23 }
0x1a2d   :  { %v1401_v15 = vmul.f32 %v1680_v10, %v1400_v13 }
0x1a31   :  { %v1682_v39 = vpop.eup %1681 }
0x1a32   :  { %v1398_v44 = vmul.f32 0.6931472, %v1682_v39  ;;  %v1684_v59 = vpop.eup %1683 }
0x1a33   :  { %v1073_v24 = vadd.f32 1.0, %v1684_v59 }
0x1a34   :  { %v1404_v17 = vsel %vm1403_vm0, %v1401_v15, %v1398_v44 }
0x1a35   :  { %v1424_v19 = vadd.f32 %v1404_v17, %v1232_v0  ;;  %1685 = vrcp.f32 %v1073_v24  ;;  %v1085_v29 = vand.u32 2147483648, %v1073_v24  ;;  %vm1079_vm6 = vweird.f32 %v1073_v24 }
0x1a36   :  { %v1083_v30 = vand.u32 2147483647, %v1073_v24 }
0x1a37   :  { %v1436_v20 = vsel %vm1244_vm4, %v1217_v3, %v1424_v19  ;;  %v1086_v6 = vor.u32 1.1754944e-38, %v1085_v29 }
0x1a38   :  { %v1448_v21 = vadd.f32 1e-06, %v1436_v20  ;;  %vm1084_vm8 = vcmp.eq.f32.partialorder %v1083_v30, 8.507059e+37 }
0x1a3a   :  { %v1460_v22 = vsel %vm57_vm2, %v1217_v3, %v1448_v21 }
0x1a3b   :  { %1473 = vst.msk [vmem:[%s2294_s9 + $0x50] sm:$0xff] %vm1462_vm15, %v1460_v22  ;;  %v1686_v25 = vpop.eup %1685 }
0x1a3c   :  { %v1075_v16 = vmul.f32 %v1686_v25, %v1073_v24  ;;  %vm1080_vm5 = vweird.f32 %v1686_v25 }
0x1a3d   :  { %vm1081_vm7 = vmor %vm1079_vm6, %vm1080_vm5 }
0x1a3e   :  { %v1076_v26 = vsub.f32 1.0, %v1075_v16 }
0x1a40   :  { %v1077_v27 = vmul.f32 %v1686_v25, %v1076_v26 }
0x1a42   :  { %v1078_v18 = vadd.f32 %v1686_v25, %v1077_v27 }
0x1a44   :  { %v1082_v4 = vsel %vm1081_vm7, %v1686_v25, %v1078_v18 }
0x1a45   :  { %v1087_v7 = vsel %vm1084_vm8, %v1086_v6, %v1082_v4 }
0x1a46   :  { %v1090_v33 = vmul.f32 %v1087_v7, %v2254_v54 }
0x1a8d   :  { %v1093_v31 = vpop.permute.xlu0 %1092 }
0x1a8e   :  { %v1095_v32 = vmul.f32 %v1093_v31, %v1087_v7 }
0x1a90   :  { %1097 = vrot.lane.b32.xlu1 %v1095_v32, %s1695_s24 }
0x1b02   :  { %v1098_v35 = vpop.permute.xlu1 %1097 }
0x1b03   :  { %v1100_v34 = vadd.f32 %v1098_v35, %v1090_v33 }
0x1b05   :  { %1687 = vtanh.f32 %v1100_v34 }
0x1b0b   :  { %v1688_v28 = vpop.eup %1687 }
0x1b0c   :  { %1103 = vrot.lane.b32.xlu2 %v1688_v28, %s1696_s29 }
0x1b66   :  { %v1104_v36 = vpop.permute.xlu2 %1103 }
0x1b67   :  { %v1106_v37 = vmul.f32 %v1104_v36, %v1087_v7 }
0x1b69   :  { %1108 = vrot.lane.b32.xlu0 %v1106_v37, %s1695_s24 }
0x1bdb   :  { %v1109_v40 = vpop.permute.xlu0 %1108 }
0x1bdc   :  { %1112 = vst.msk [vmem:[#allocation3 + $0x58] sm:$0xff] %vm294_vm1, %v1109_v40 }
0x1be3   :  { %v1124_v41 = vld [vmem:[#allocation3 + $0x58] sm:$0xff] }
0x1be4   :  { %1532 = vmatmul.msk.f32.gmra.mxu3 %vm294_vm1, %v1124_v41 }
0x1c67   :  { %v1219_v47 = vpop.f32.mrf.mxu3 }
0x1c68   :  { %v1220_v42 = vadd.f32 %v2093_v48, %v1219_v47 }
0x1c6a   :  { %v1269_v43 = vand.u32 2147483647, %v1220_v42  ;;  %v1233_v58 = vmax.f32 %v1220_v42, 0.0  ;;  %vm1245_vm1 = vcmp.ne.f32.partialorder %v1220_v42, %v1220_v42 }
0x1c6c   :  { %v1281_v49 = vsub.f32 0.0, %v1269_v43 }
0x1c6e   :  { %v1304_v50 = vmul.f32 1.442695, %v1281_v49 }
0x1c70   :  { %1689 = vpow2.f32 %v1304_v50 }
0x1c76   :  { %v1690_v51 = vpop.eup %1689 }
0x1c77   :  { %v1405_v46 = vadd.f32 1.0, %v1690_v51  ;;  %v1408_v52 = vmul.f32 -0.5, %v1690_v51  ;;  %v1411_v53 = vand.u32 2147483647, %v1690_v51 }
0x1c79   :  { %1691 = vlog2.f32 %v1405_v46  ;;  %v1409_v2 = vadd.f32 1.0, %v1408_v52  ;;  %vm1412_vm9 = vcmp.lt.f32.partialorder %v1411_v53, 0.0004427343 }
0x1c7b   :  { %v1410_v57 = vmul.f32 %v1690_v51, %v1409_v2 }
0x1c7f   :  { %v1692_v54 = vpop.eup %1691 }
0x1c80   :  { %v1407_v55 = vmul.f32 0.6931472, %v1692_v54 }
0x1c82   :  { %v1413_v60 = vsel %vm1412_vm9, %v1410_v57, %v1407_v55 }
0x1c83   :  { %v1425_v61 = vadd.f32 %v1413_v60, %v1233_v58 }
0x1c85   :  { %v1437_v45 = vsel %vm1245_vm1, %v1220_v42, %v1425_v61 }
0x1c86   :  { %v1449_v48 = vadd.f32 1e-06, %v1437_v45 }
0x1c88   :  { %v1461_v56 = vsel %vm57_vm2, %v1220_v42, %v1449_v48 }
0x1c89   :  { %1474 = vst.msk [vmem:[%s2294_s9 + $0x58] sm:$0xff] %vm1462_vm15, %v1461_v56 }

</bundles_post_ra>
